<compile_context>
chip_gen: v6e
topology: v6e:2x2x1
jax: 0.10.0
libtpu: 0.0.40
codegen_flags: <defaults>
</compile_context>

<pallas_src>
import jax
import jax.numpy as jnp
from jax.experimental import pallas as pl
from jax.experimental.pallas import tpu as pltpu

# ---------------- configuration (small but consistent with the module) -------
INPUT_DIM = 11
HIDDEN_DIM = 32          # LSTM cell-1 hidden size (256 in the script; shrunk)
EMBEDDING_DIM = 24
STEP = 5
HIDDEN_TR = 12
HIDDEN_LIST = [64, 48]   # hidden_list; mirrored -> [64, 48, 64]
MASK_C = 0.3
MASK_H = 0.3
BN_EPS = 1e-5
LEAKY_SLOPE = 0.8
BATCH = 8

CON_DIM = STEP * INPUT_DIM                      # 55
DEEP_IN = CON_DIM + HIDDEN_TR                   # 67
assert DEEP_IN > HIDDEN_LIST[-1]

VMEM = pl.BlockSpec(memory_space=pltpu.MemorySpace.VMEM)


# ---------------- fused kernel ------------------------------------------------
def _cell_act(gates, c_prev, hdim):
    """Gate columns are pre-permuted to [i, f, o, g]: one sigmoid, one tanh."""
    sig = jax.nn.sigmoid(gates[:, :3 * hdim])
    g = jnp.tanh(gates[:, 3 * hdim:4 * hdim])
    i = sig[:, 0 * hdim:1 * hdim]
    f = sig[:, 1 * hdim:2 * hdim]
    o = sig[:, 2 * hdim:3 * hdim]
    c_new = f * c_prev + i * g
    h_new = o * jnp.tanh(c_new)
    return h_new, c_new


def _bn_leaky(x, gamma, beta):
    """BatchNorm1d (train mode: batch mean, biased var) + LeakyReLU(0.8)."""
    mean = jnp.mean(x, axis=0, keepdims=True)
    var = jnp.mean((x - mean) ** 2, axis=0, keepdims=True)
    x = gamma * (x - mean) * jax.lax.rsqrt(var + BN_EPS) + beta
    return jnp.where(x >= 0, x, LEAKY_SLOPE * x)


def fused_kernel(ts_ref, u1_ref, u2_ref,
                 wblk1_ref, b1t_ref, whh1_ref,
                 w2_ref, b2_ref,
                 fcw_ref, fcb_ref,
                 *rest):
    # rest = deep params (15 refs) + (deep_out_ref, ori_ref)
    deep = rest[:-2]
    out_ref, ori_ref = rest[-2], rest[-1]

    batch = ts_ref.shape[0]
    H, E = HIDDEN_DIM, EMBEDDING_DIM

    con = ts_ref[...]                                         # (B, 55)

    # ---- LSTM encoder ----
    # All-timestep input projections in one matmul (off the recurrent chain),
    # bias already folded in via the pre-tiled b1.
    proj = jnp.dot(con, wblk1_ref[...],
                   preferred_element_type=jnp.float32) + b1t_ref[...]  # (B, 5*4H)

    whh1 = whh1_ref[...]
    w2 = w2_ref[...]
    b2 = b2_ref[...]

    h0 = jnp.zeros((batch, H), jnp.float32)
    c0 = jnp.zeros((batch, H), jnp.float32)
    h1 = jnp.zeros((batch, E), jnp.float32)
    c1 = jnp.zeros((batch, E), jnp.float32)

    for t in range(STEP):                       # static unroll (STEP is small)
        g1 = proj[:, t * 4 * H:(t + 1) * 4 * H] + jnp.dot(
            h0, whh1, preferred_element_type=jnp.float32)
        h0, c0 = _cell_act(g1, c0, H)
        xh = jnp.concatenate([h0, h1], axis=1)                # (B, H+E)
        g2 = jnp.dot(xh, w2, preferred_element_type=jnp.float32) + b2
        h1, c1 = _cell_act(g2, c1, E)

    # ---- MaskAndConcat ----
    h_tr = jnp.dot(h1, fcw_ref[...],
                   preferred_element_type=jnp.float32) + fcb_ref[...]  # (B, 12)
    mean = jnp.mean(h_tr, axis=0, keepdims=True)
    # torch.std default is unbiased (ddof = 1)
    var = jnp.sum((h_tr - mean) ** 2, axis=0, keepdims=True) / (batch - 1)
    h_tr = (h_tr - mean) * jax.lax.rsqrt(var)

    m1f = (u1_ref[...] >= MASK_C).astype(jnp.float32)
    m2f = (u2_ref[...] >= MASK_H).astype(jnp.float32)
    mc = con * m1f                                            # (B, 55)
    mh = h_tr * m2f                                           # (B, 12)

    ori_ref[...] = jnp.concatenate([con, h_tr], axis=1)       # (B, 67), one-time

    # ---- DeepComponent ----
    # First layer: split matmul avoids materializing the masked 67-wide concat.
    w1c, w1h, db1, dg1, dbe1 = deep[0], deep[1], deep[2], deep[3], deep[4]
    x = (jnp.dot(mc, w1c[...], preferred_element_type=jnp.float32)
         + jnp.dot(mh, w1h[...], preferred_element_type=jnp.float32)
         + db1[...])
    x = _bn_leaky(x, dg1[...], dbe1[...])
    # Dropout(p=0) is the identity.
    # TODO(synk): non-zero dropout (training mode) not implemented.

    idx = 5
    n_rest = (len(deep) - 5 - 2) // 4
    for _ in range(n_rest):
        w, b, g, be = deep[idx], deep[idx + 1], deep[idx + 2], deep[idx + 3]
        x = jnp.dot(x, w[...], preferred_element_type=jnp.float32) + b[...]
        x = _bn_leaky(x, g[...], be[...])
        idx += 4

    wf, bf = deep[-2], deep[-1]
    out_ref[...] = jnp.dot(x, wf[...],
                           preferred_element_type=jnp.float32) + bf[...]


# ---------------- parameter init (deterministic, PyTorch-style uniform) ------
def _permute_gates(w_t, hdim):
    """Reorder gate columns from PyTorch [i, f, g, o] to [i, f, o, g]."""
    return jnp.concatenate([w_t[:, :2 * hdim],
                            w_t[:, 3 * hdim:4 * hdim],
                            w_t[:, 2 * hdim:3 * hdim]], axis=1)


def init_params(key):
    def uni(k, shape, bound):
        return jax.random.uniform(k, shape, jnp.float32, -bound, bound)

    keys = iter(jax.random.split(key, 32))
    p = {}

    # LSTMCell 1: input_dim -> hidden_dim
    H, E = HIDDEN_DIM, EMBEDDING_DIM
    k1 = 1.0 / (H ** 0.5)
    w_ih1 = uni(next(keys), (4 * H, INPUT_DIM), k1)
    w_hh1 = uni(next(keys), (4 * H, H), k1)
    b_ih1 = uni(next(keys), (4 * H,), k1)
    b_hh1 = uni(next(keys), (4 * H,), k1)
    wih1_t = _permute_gates(w_ih1.T, H)                       # (11, 128)
    p['whh1_t'] = _permute_gates(w_hh1.T, H)                  # (32, 128)
    b1 = _permute_gates((b_ih1 + b_hh1).reshape(1, -1), H)    # (1, 128)

    # Block-diagonal stack of wih1_t: one matmul computes every timestep's
    # x @ W_ih1 from the flattened (B, step*in) input, with 128-aligned slices.
    wblk = jnp.zeros((CON_DIM, STEP * 4 * H), jnp.float32)
    for t in range(STEP):
        wblk = wblk.at[t * INPUT_DIM:(t + 1) * INPUT_DIM,
                       t * 4 * H:(t + 1) * 4 * H].set(wih1_t)
    p['wblk1'] = wblk                                         # (55, 640)
    p['b1t'] = jnp.tile(b1, (1, STEP))                        # (1, 640)

    # LSTMCell 2: hidden_dim -> embedding_dim (input + recurrent weights fused)
    k2 = 1.0 / (E ** 0.5)
    w_ih2 = uni(next(keys), (4 * E, H), k2)
    w_hh2 = uni(next(keys), (4 * E, E), k2)
    b_ih2 = uni(next(keys), (4 * E,), k2)
    b_hh2 = uni(next(keys), (4 * E,), k2)
    p['w2'] = jnp.concatenate([_permute_gates(w_ih2.T, E),
                               _permute_gates(w_hh2.T, E)], axis=0)  # (56, 96)
    p['b2'] = _permute_gates((b_ih2 + b_hh2).reshape(1, -1), E)      # (1, 96)

    # MaskAndConcat fc: embedding_dim -> hidden_tr
    kf = 1.0 / (E ** 0.5)
    p['fc_w_t'] = uni(next(keys), (HIDDEN_TR, E), kf).T
    p['fc_b'] = uni(next(keys), (HIDDEN_TR,), kf).reshape(1, -1)

    # DeepComponent
    dims = HIDDEN_LIST + HIDDEN_LIST[::-1][1:]                # [64, 48, 64]
    deep = []
    in_d = DEEP_IN
    for li, hd in enumerate(dims):
        kd = 1.0 / (in_d ** 0.5)
        w = uni(next(keys), (hd, in_d), kd)
        b = uni(next(keys), (hd,), kd)
        w_t = w.T                                             # (in_d, hd)
        if li == 0:
            # split first-layer weight along the 55 | 12 concat boundary
            deep += [w_t[:CON_DIM], w_t[CON_DIM:]]
        else:
            deep += [w_t]
        deep += [b.reshape(1, -1),
                 jnp.ones((1, hd), jnp.float32),
                 jnp.zeros((1, hd), jnp.float32)]
        in_d = hd
    kd = 1.0 / (in_d ** 0.5)
    wf = uni(next(keys), (DEEP_IN, in_d), kd)
    bf = uni(next(keys), (DEEP_IN,), kd)
    deep += [wf.T, bf.reshape(1, -1)]
    p['deep'] = deep
    return p


# ---------------- forward wrapper ---------------------------------------------
def encoder_decoder_forward(params, time_series, u1, u2):
    batch = time_series.shape[0]
    # contiguous reshape: no copy, no transpose
    time_re = time_series.reshape(batch, -1)                  # (batch, step*in)

    deep_out, ori = pl.pallas_call(
        fused_kernel,
        out_shape=(jax.ShapeDtypeStruct((batch, DEEP_IN), jnp.float32),
                   jax.ShapeDtypeStruct((batch, DEEP_IN), jnp.float32)),
        in_specs=[VMEM] * (10 + len(params['deep'])),
        out_specs=(VMEM, VMEM),
    )(time_re, u1, u2,
      params['wblk1'], params['b1t'], params['whh1_t'],
      params['w2'], params['b2'],
      params['fc_w_t'], params['fc_b'],
      *params['deep'])

    # boolean masks are returned outputs of the module (torch.rand >= rate)
    mask1 = u1 >= MASK_C
    mask2 = u2 >= MASK_H
    return deep_out, ori, mask1, mask2


# ---------------- main ---------------------------------------------------------
if __name__ == "__main__":
    key = jax.random.PRNGKey(0)
    kp, kx, km1, km2 = jax.random.split(key, 4)

    params = init_params(kp)
    time_series = jax.random.normal(kx, (BATCH, STEP, INPUT_DIM), jnp.float32)

    # uniforms for the keep-masks (mask = u >= mask_rate), generated host-side
    u1 = jax.random.uniform(km1, (BATCH, CON_DIM), jnp.float32)
    u2 = jax.random.uniform(km2, (BATCH, HIDDEN_TR), jnp.float32)

    fwd = jax.jit(encoder_decoder_forward)
    deep_out, ori, m1, m2 = fwd(params, time_series, u1, u2)
    jax.block_until_ready((deep_out, ori, m1, m2))

    assert deep_out.shape == (BATCH, DEEP_IN)
    assert ori.shape == (BATCH, DEEP_IN)
    assert m1.shape == (BATCH, CON_DIM) and m1.dtype == jnp.bool_
    assert m2.shape == (BATCH, HIDDEN_TR) and m2.dtype == jnp.bool_
    assert bool(jnp.all(jnp.isfinite(deep_out))) and bool(jnp.all(jnp.isfinite(ori)))
    print("KERNEL_OK")
</pallas_src>

<mosaic_0001>
module attributes {stable_mosaic.version = 11 : i64} {
  func.func @fused_kernel(%arg0: memref<8x55xf32, #tpu.memory_space<vmem>>, %arg1: memref<8x55xf32, #tpu.memory_space<vmem>>, %arg2: memref<8x12xf32, #tpu.memory_space<vmem>>, %arg3: memref<55x640xf32, #tpu.memory_space<vmem>>, %arg4: memref<1x640xf32, #tpu.memory_space<vmem>>, %arg5: memref<32x128xf32, #tpu.memory_space<vmem>>, %arg6: memref<56x96xf32, #tpu.memory_space<vmem>>, %arg7: memref<1x96xf32, #tpu.memory_space<vmem>>, %arg8: memref<24x12xf32, #tpu.memory_space<vmem>>, %arg9: memref<1x12xf32, #tpu.memory_space<vmem>>, %arg10: memref<55x64xf32, #tpu.memory_space<vmem>>, %arg11: memref<12x64xf32, #tpu.memory_space<vmem>>, %arg12: memref<1x64xf32, #tpu.memory_space<vmem>>, %arg13: memref<1x64xf32, #tpu.memory_space<vmem>>, %arg14: memref<1x64xf32, #tpu.memory_space<vmem>>, %arg15: memref<64x48xf32, #tpu.memory_space<vmem>>, %arg16: memref<1x48xf32, #tpu.memory_space<vmem>>, %arg17: memref<1x48xf32, #tpu.memory_space<vmem>>, %arg18: memref<1x48xf32, #tpu.memory_space<vmem>>, %arg19: memref<48x64xf32, #tpu.memory_space<vmem>>, %arg20: memref<1x64xf32, #tpu.memory_space<vmem>>, %arg21: memref<1x64xf32, #tpu.memory_space<vmem>>, %arg22: memref<1x64xf32, #tpu.memory_space<vmem>>, %arg23: memref<64x67xf32, #tpu.memory_space<vmem>>, %arg24: memref<1x67xf32, #tpu.memory_space<vmem>>, %arg25: memref<8x67xf32, #tpu.memory_space<vmem>>, %arg26: memref<8x67xf32, #tpu.memory_space<vmem>>) attributes {dimension_semantics = [], scalar_prefetch = 0 : i64, scratch_operands = 0 : i64, tpu.core_type = #tpu.core_type<tc>} {
    %c0 = arith.constant 0 : index
    %c0_0 = arith.constant 0 : index
    %0 = vector.load %arg0[%c0, %c0_0] : memref<8x55xf32, #tpu.memory_space<vmem>>, vector<8x55xf32>
    %c0_1 = arith.constant 0 : index
    %c0_2 = arith.constant 0 : index
    %1 = vector.load %arg3[%c0_1, %c0_2] : memref<55x640xf32, #tpu.memory_space<vmem>>, vector<55x640xf32>
    %cst = arith.constant dense<0.000000e+00> : vector<8x640xf32>
    %2 = tpu.matmul %0, %1, %cst {dimension_numbers = #tpu.dot_dimension_numbers<[1], [0], [0], [1], [0, 0, 1, 1], [], []>} : vector<8x55xf32>, vector<55x640xf32>, vector<8x640xf32> -> vector<8x640xf32>
    %c0_3 = arith.constant 0 : index
    %c0_4 = arith.constant 0 : index
    %3 = vector.load %arg4[%c0_3, %c0_4] : memref<1x640xf32, #tpu.memory_space<vmem>>, vector<1x640xf32>
    %4 = vector.broadcast %3 : vector<1x640xf32> to vector<8x640xf32>
    %5 = arith.addf %2, %4 : vector<8x640xf32>
    %c0_5 = arith.constant 0 : index
    %c0_6 = arith.constant 0 : index
    %6 = vector.load %arg5[%c0_5, %c0_6] : memref<32x128xf32, #tpu.memory_space<vmem>>, vector<32x128xf32>
    %c0_7 = arith.constant 0 : index
    %c0_8 = arith.constant 0 : index
    %7 = vector.load %arg6[%c0_7, %c0_8] : memref<56x96xf32, #tpu.memory_space<vmem>>, vector<56x96xf32>
    %c0_9 = arith.constant 0 : index
    %c0_10 = arith.constant 0 : index
    %8 = vector.load %arg7[%c0_9, %c0_10] : memref<1x96xf32, #tpu.memory_space<vmem>>, vector<1x96xf32>
    %cst_11 = arith.constant 0.000000e+00 : f32
    %9 = vector.broadcast %cst_11 : f32 to vector<8x32xf32>
    %cst_12 = arith.constant 0.000000e+00 : f32
    %10 = vector.broadcast %cst_12 : f32 to vector<8x32xf32>
    %cst_13 = arith.constant 0.000000e+00 : f32
    %11 = vector.broadcast %cst_13 : f32 to vector<8x24xf32>
    %cst_14 = arith.constant 0.000000e+00 : f32
    %12 = vector.broadcast %cst_14 : f32 to vector<8x24xf32>
    %13 = vector.extract_strided_slice %5 {offsets = [0, 0], sizes = [8, 128], strides = [1, 1]} : vector<8x640xf32> to vector<8x128xf32>
    %cst_15 = arith.constant dense<0.000000e+00> : vector<8x128xf32>
    %14 = tpu.matmul %9, %6, %cst_15 {dimension_numbers = #tpu.dot_dimension_numbers<[1], [0], [0], [1], [0, 0, 1, 1], [], []>} : vector<8x32xf32>, vector<32x128xf32>, vector<8x128xf32> -> vector<8x128xf32>
    %15 = arith.addf %13, %14 : vector<8x128xf32>
    %16 = vector.extract_strided_slice %15 {offsets = [0, 0], sizes = [8, 96], strides = [1, 1]} : vector<8x128xf32> to vector<8x96xf32>
    %17 = arith.negf %16 : vector<8x96xf32>
    %18 = math.exp %17 : vector<8x96xf32>
    %cst_16 = arith.constant 1.000000e+00 : f32
    %19 = vector.broadcast %cst_16 : f32 to vector<8x96xf32>
    %20 = arith.addf %19, %18 : vector<8x96xf32>
    %21 = arith.divf %19, %20 : vector<8x96xf32>
    %22 = vector.extract_strided_slice %15 {offsets = [0, 96], sizes = [8, 32], strides = [1, 1]} : vector<8x128xf32> to vector<8x32xf32>
    %23 = math.tanh %22 : vector<8x32xf32>
    %24 = vector.extract_strided_slice %21 {offsets = [0, 0], sizes = [8, 32], strides = [1, 1]} : vector<8x96xf32> to vector<8x32xf32>
    %25 = vector.extract_strided_slice %21 {offsets = [0, 32], sizes = [8, 32], strides = [1, 1]} : vector<8x96xf32> to vector<8x32xf32>
    %26 = vector.extract_strided_slice %21 {offsets = [0, 64], sizes = [8, 32], strides = [1, 1]} : vector<8x96xf32> to vector<8x32xf32>
    %27 = arith.mulf %25, %10 : vector<8x32xf32>
    %28 = arith.mulf %24, %23 : vector<8x32xf32>
    %29 = arith.addf %27, %28 : vector<8x32xf32>
    %30 = math.tanh %29 : vector<8x32xf32>
    %31 = arith.mulf %26, %30 : vector<8x32xf32>
    %32 = tpu.concatenate %31, %11 in 1 : vector<8x32xf32>, vector<8x24xf32> -> vector<8x56xf32>
    %cst_17 = arith.constant dense<0.000000e+00> : vector<8x96xf32>
    %33 = tpu.matmul %32, %7, %cst_17 {dimension_numbers = #tpu.dot_dimension_numbers<[1], [0], [0], [1], [0, 0, 1, 1], [], []>} : vector<8x56xf32>, vector<56x96xf32>, vector<8x96xf32> -> vector<8x96xf32>
    %34 = vector.broadcast %8 : vector<1x96xf32> to vector<8x96xf32>
    %35 = arith.addf %33, %34 : vector<8x96xf32>
    %36 = vector.extract_strided_slice %35 {offsets = [0, 0], sizes = [8, 72], strides = [1, 1]} : vector<8x96xf32> to vector<8x72xf32>
    %37 = arith.negf %36 : vector<8x72xf32>
    %38 = math.exp %37 : vector<8x72xf32>
    %cst_18 = arith.constant 1.000000e+00 : f32
    %39 = vector.broadcast %cst_18 : f32 to vector<8x72xf32>
    %40 = arith.addf %39, %38 : vector<8x72xf32>
    %41 = arith.divf %39, %40 : vector<8x72xf32>
    %42 = vector.extract_strided_slice %35 {offsets = [0, 72], sizes = [8, 24], strides = [1, 1]} : vector<8x96xf32> to vector<8x24xf32>
    %43 = math.tanh %42 : vector<8x24xf32>
    %44 = vector.extract_strided_slice %41 {offsets = [0, 0], sizes = [8, 24], strides = [1, 1]} : vector<8x72xf32> to vector<8x24xf32>
    %45 = vector.extract_strided_slice %41 {offsets = [0, 24], sizes = [8, 24], strides = [1, 1]} : vector<8x72xf32> to vector<8x24xf32>
    %46 = vector.extract_strided_slice %41 {offsets = [0, 48], sizes = [8, 24], strides = [1, 1]} : vector<8x72xf32> to vector<8x24xf32>
    %47 = arith.mulf %45, %12 : vector<8x24xf32>
    %48 = arith.mulf %44, %43 : vector<8x24xf32>
    %49 = arith.addf %47, %48 : vector<8x24xf32>
    %50 = math.tanh %49 : vector<8x24xf32>
    %51 = arith.mulf %46, %50 : vector<8x24xf32>
    %52 = vector.extract_strided_slice %5 {offsets = [0, 128], sizes = [8, 128], strides = [1, 1]} : vector<8x640xf32> to vector<8x128xf32>
    %cst_19 = arith.constant dense<0.000000e+00> : vector<8x128xf32>
    %53 = tpu.matmul %31, %6, %cst_19 {dimension_numbers = #tpu.dot_dimension_numbers<[1], [0], [0], [1], [0, 0, 1, 1], [], []>} : vector<8x32xf32>, vector<32x128xf32>, vector<8x128xf32> -> vector<8x128xf32>
    %54 = arith.addf %52, %53 : vector<8x128xf32>
    %55 = vector.extract_strided_slice %54 {offsets = [0, 0], sizes = [8, 96], strides = [1, 1]} : vector<8x128xf32> to vector<8x96xf32>
    %56 = arith.negf %55 : vector<8x96xf32>
    %57 = math.exp %56 : vector<8x96xf32>
    %cst_20 = arith.constant 1.000000e+00 : f32
    %58 = vector.broadcast %cst_20 : f32 to vector<8x96xf32>
    %59 = arith.addf %58, %57 : vector<8x96xf32>
    %60 = arith.divf %58, %59 : vector<8x96xf32>
    %61 = vector.extract_strided_slice %54 {offsets = [0, 96], sizes = [8, 32], strides = [1, 1]} : vector<8x128xf32> to vector<8x32xf32>
    %62 = math.tanh %61 : vector<8x32xf32>
    %63 = vector.extract_strided_slice %60 {offsets = [0, 0], sizes = [8, 32], strides = [1, 1]} : vector<8x96xf32> to vector<8x32xf32>
    %64 = vector.extract_strided_slice %60 {offsets = [0, 32], sizes = [8, 32], strides = [1, 1]} : vector<8x96xf32> to vector<8x32xf32>
    %65 = vector.extract_strided_slice %60 {offsets = [0, 64], sizes = [8, 32], strides = [1, 1]} : vector<8x96xf32> to vector<8x32xf32>
    %66 = arith.mulf %64, %29 : vector<8x32xf32>
    %67 = arith.mulf %63, %62 : vector<8x32xf32>
    %68 = arith.addf %66, %67 : vector<8x32xf32>
    %69 = math.tanh %68 : vector<8x32xf32>
    %70 = arith.mulf %65, %69 : vector<8x32xf32>
    %71 = tpu.concatenate %70, %51 in 1 : vector<8x32xf32>, vector<8x24xf32> -> vector<8x56xf32>
    %cst_21 = arith.constant dense<0.000000e+00> : vector<8x96xf32>
    %72 = tpu.matmul %71, %7, %cst_21 {dimension_numbers = #tpu.dot_dimension_numbers<[1], [0], [0], [1], [0, 0, 1, 1], [], []>} : vector<8x56xf32>, vector<56x96xf32>, vector<8x96xf32> -> vector<8x96xf32>
    %73 = vector.broadcast %8 : vector<1x96xf32> to vector<8x96xf32>
    %74 = arith.addf %72, %73 : vector<8x96xf32>
    %75 = vector.extract_strided_slice %74 {offsets = [0, 0], sizes = [8, 72], strides = [1, 1]} : vector<8x96xf32> to vector<8x72xf32>
    %76 = arith.negf %75 : vector<8x72xf32>
    %77 = math.exp %76 : vector<8x72xf32>
    %cst_22 = arith.constant 1.000000e+00 : f32
    %78 = vector.broadcast %cst_22 : f32 to vector<8x72xf32>
    %79 = arith.addf %78, %77 : vector<8x72xf32>
    %80 = arith.divf %78, %79 : vector<8x72xf32>
    %81 = vector.extract_strided_slice %74 {offsets = [0, 72], sizes = [8, 24], strides = [1, 1]} : vector<8x96xf32> to vector<8x24xf32>
    %82 = math.tanh %81 : vector<8x24xf32>
    %83 = vector.extract_strided_slice %80 {offsets = [0, 0], sizes = [8, 24], strides = [1, 1]} : vector<8x72xf32> to vector<8x24xf32>
    %84 = vector.extract_strided_slice %80 {offsets = [0, 24], sizes = [8, 24], strides = [1, 1]} : vector<8x72xf32> to vector<8x24xf32>
    %85 = vector.extract_strided_slice %80 {offsets = [0, 48], sizes = [8, 24], strides = [1, 1]} : vector<8x72xf32> to vector<8x24xf32>
    %86 = arith.mulf %84, %49 : vector<8x24xf32>
    %87 = arith.mulf %83, %82 : vector<8x24xf32>
    %88 = arith.addf %86, %87 : vector<8x24xf32>
    %89 = math.tanh %88 : vector<8x24xf32>
    %90 = arith.mulf %85, %89 : vector<8x24xf32>
    %91 = vector.extract_strided_slice %5 {offsets = [0, 256], sizes = [8, 128], strides = [1, 1]} : vector<8x640xf32> to vector<8x128xf32>
    %cst_23 = arith.constant dense<0.000000e+00> : vector<8x128xf32>
    %92 = tpu.matmul %70, %6, %cst_23 {dimension_numbers = #tpu.dot_dimension_numbers<[1], [0], [0], [1], [0, 0, 1, 1], [], []>} : vector<8x32xf32>, vector<32x128xf32>, vector<8x128xf32> -> vector<8x128xf32>
    %93 = arith.addf %91, %92 : vector<8x128xf32>
    %94 = vector.extract_strided_slice %93 {offsets = [0, 0], sizes = [8, 96], strides = [1, 1]} : vector<8x128xf32> to vector<8x96xf32>
    %95 = arith.negf %94 : vector<8x96xf32>
    %96 = math.exp %95 : vector<8x96xf32>
    %cst_24 = arith.constant 1.000000e+00 : f32
    %97 = vector.broadcast %cst_24 : f32 to vector<8x96xf32>
    %98 = arith.addf %97, %96 : vector<8x96xf32>
    %99 = arith.divf %97, %98 : vector<8x96xf32>
    %100 = vector.extract_strided_slice %93 {offsets = [0, 96], sizes = [8, 32], strides = [1, 1]} : vector<8x128xf32> to vector<8x32xf32>
    %101 = math.tanh %100 : vector<8x32xf32>
    %102 = vector.extract_strided_slice %99 {offsets = [0, 0], sizes = [8, 32], strides = [1, 1]} : vector<8x96xf32> to vector<8x32xf32>
    %103 = vector.extract_strided_slice %99 {offsets = [0, 32], sizes = [8, 32], strides = [1, 1]} : vector<8x96xf32> to vector<8x32xf32>
    %104 = vector.extract_strided_slice %99 {offsets = [0, 64], sizes = [8, 32], strides = [1, 1]} : vector<8x96xf32> to vector<8x32xf32>
    %105 = arith.mulf %103, %68 : vector<8x32xf32>
    %106 = arith.mulf %102, %101 : vector<8x32xf32>
    %107 = arith.addf %105, %106 : vector<8x32xf32>
    %108 = math.tanh %107 : vector<8x32xf32>
    %109 = arith.mulf %104, %108 : vector<8x32xf32>
    %110 = tpu.concatenate %109, %90 in 1 : vector<8x32xf32>, vector<8x24xf32> -> vector<8x56xf32>
    %cst_25 = arith.constant dense<0.000000e+00> : vector<8x96xf32>
    %111 = tpu.matmul %110, %7, %cst_25 {dimension_numbers = #tpu.dot_dimension_numbers<[1], [0], [0], [1], [0, 0, 1, 1], [], []>} : vector<8x56xf32>, vector<56x96xf32>, vector<8x96xf32> -> vector<8x96xf32>
    %112 = vector.broadcast %8 : vector<1x96xf32> to vector<8x96xf32>
    %113 = arith.addf %111, %112 : vector<8x96xf32>
    %114 = vector.extract_strided_slice %113 {offsets = [0, 0], sizes = [8, 72], strides = [1, 1]} : vector<8x96xf32> to vector<8x72xf32>
    %115 = arith.negf %114 : vector<8x72xf32>
    %116 = math.exp %115 : vector<8x72xf32>
    %cst_26 = arith.constant 1.000000e+00 : f32
    %117 = vector.broadcast %cst_26 : f32 to vector<8x72xf32>
    %118 = arith.addf %117, %116 : vector<8x72xf32>
    %119 = arith.divf %117, %118 : vector<8x72xf32>
    %120 = vector.extract_strided_slice %113 {offsets = [0, 72], sizes = [8, 24], strides = [1, 1]} : vector<8x96xf32> to vector<8x24xf32>
    %121 = math.tanh %120 : vector<8x24xf32>
    %122 = vector.extract_strided_slice %119 {offsets = [0, 0], sizes = [8, 24], strides = [1, 1]} : vector<8x72xf32> to vector<8x24xf32>
    %123 = vector.extract_strided_slice %119 {offsets = [0, 24], sizes = [8, 24], strides = [1, 1]} : vector<8x72xf32> to vector<8x24xf32>
    %124 = vector.extract_strided_slice %119 {offsets = [0, 48], sizes = [8, 24], strides = [1, 1]} : vector<8x72xf32> to vector<8x24xf32>
    %125 = arith.mulf %123, %88 : vector<8x24xf32>
    %126 = arith.mulf %122, %121 : vector<8x24xf32>
    %127 = arith.addf %125, %126 : vector<8x24xf32>
    %128 = math.tanh %127 : vector<8x24xf32>
    %129 = arith.mulf %124, %128 : vector<8x24xf32>
    %130 = vector.extract_strided_slice %5 {offsets = [0, 384], sizes = [8, 128], strides = [1, 1]} : vector<8x640xf32> to vector<8x128xf32>
    %cst_27 = arith.constant dense<0.000000e+00> : vector<8x128xf32>
    %131 = tpu.matmul %109, %6, %cst_27 {dimension_numbers = #tpu.dot_dimension_numbers<[1], [0], [0], [1], [0, 0, 1, 1], [], []>} : vector<8x32xf32>, vector<32x128xf32>, vector<8x128xf32> -> vector<8x128xf32>
    %132 = arith.addf %130, %131 : vector<8x128xf32>
    %133 = vector.extract_strided_slice %132 {offsets = [0, 0], sizes = [8, 96], strides = [1, 1]} : vector<8x128xf32> to vector<8x96xf32>
    %134 = arith.negf %133 : vector<8x96xf32>
    %135 = math.exp %134 : vector<8x96xf32>
    %cst_28 = arith.constant 1.000000e+00 : f32
    %136 = vector.broadcast %cst_28 : f32 to vector<8x96xf32>
    %137 = arith.addf %136, %135 : vector<8x96xf32>
    %138 = arith.divf %136, %137 : vector<8x96xf32>
    %139 = vector.extract_strided_slice %132 {offsets = [0, 96], sizes = [8, 32], strides = [1, 1]} : vector<8x128xf32> to vector<8x32xf32>
    %140 = math.tanh %139 : vector<8x32xf32>
    %141 = vector.extract_strided_slice %138 {offsets = [0, 0], sizes = [8, 32], strides = [1, 1]} : vector<8x96xf32> to vector<8x32xf32>
    %142 = vector.extract_strided_slice %138 {offsets = [0, 32], sizes = [8, 32], strides = [1, 1]} : vector<8x96xf32> to vector<8x32xf32>
    %143 = vector.extract_strided_slice %138 {offsets = [0, 64], sizes = [8, 32], strides = [1, 1]} : vector<8x96xf32> to vector<8x32xf32>
    %144 = arith.mulf %142, %107 : vector<8x32xf32>
    %145 = arith.mulf %141, %140 : vector<8x32xf32>
    %146 = arith.addf %144, %145 : vector<8x32xf32>
    %147 = math.tanh %146 : vector<8x32xf32>
    %148 = arith.mulf %143, %147 : vector<8x32xf32>
    %149 = tpu.concatenate %148, %129 in 1 : vector<8x32xf32>, vector<8x24xf32> -> vector<8x56xf32>
    %cst_29 = arith.constant dense<0.000000e+00> : vector<8x96xf32>
    %150 = tpu.matmul %149, %7, %cst_29 {dimension_numbers = #tpu.dot_dimension_numbers<[1], [0], [0], [1], [0, 0, 1, 1], [], []>} : vector<8x56xf32>, vector<56x96xf32>, vector<8x96xf32> -> vector<8x96xf32>
    %151 = vector.broadcast %8 : vector<1x96xf32> to vector<8x96xf32>
    %152 = arith.addf %150, %151 : vector<8x96xf32>
    %153 = vector.extract_strided_slice %152 {offsets = [0, 0], sizes = [8, 72], strides = [1, 1]} : vector<8x96xf32> to vector<8x72xf32>
    %154 = arith.negf %153 : vector<8x72xf32>
    %155 = math.exp %154 : vector<8x72xf32>
    %cst_30 = arith.constant 1.000000e+00 : f32
    %156 = vector.broadcast %cst_30 : f32 to vector<8x72xf32>
    %157 = arith.addf %156, %155 : vector<8x72xf32>
    %158 = arith.divf %156, %157 : vector<8x72xf32>
    %159 = vector.extract_strided_slice %152 {offsets = [0, 72], sizes = [8, 24], strides = [1, 1]} : vector<8x96xf32> to vector<8x24xf32>
    %160 = math.tanh %159 : vector<8x24xf32>
    %161 = vector.extract_strided_slice %158 {offsets = [0, 0], sizes = [8, 24], strides = [1, 1]} : vector<8x72xf32> to vector<8x24xf32>
    %162 = vector.extract_strided_slice %158 {offsets = [0, 24], sizes = [8, 24], strides = [1, 1]} : vector<8x72xf32> to vector<8x24xf32>
    %163 = vector.extract_strided_slice %158 {offsets = [0, 48], sizes = [8, 24], strides = [1, 1]} : vector<8x72xf32> to vector<8x24xf32>
    %164 = arith.mulf %162, %127 : vector<8x24xf32>
    %165 = arith.mulf %161, %160 : vector<8x24xf32>
    %166 = arith.addf %164, %165 : vector<8x24xf32>
    %167 = math.tanh %166 : vector<8x24xf32>
    %168 = arith.mulf %163, %167 : vector<8x24xf32>
    %169 = vector.extract_strided_slice %5 {offsets = [0, 512], sizes = [8, 128], strides = [1, 1]} : vector<8x640xf32> to vector<8x128xf32>
    %cst_31 = arith.constant dense<0.000000e+00> : vector<8x128xf32>
    %170 = tpu.matmul %148, %6, %cst_31 {dimension_numbers = #tpu.dot_dimension_numbers<[1], [0], [0], [1], [0, 0, 1, 1], [], []>} : vector<8x32xf32>, vector<32x128xf32>, vector<8x128xf32> -> vector<8x128xf32>
    %171 = arith.addf %169, %170 : vector<8x128xf32>
    %172 = vector.extract_strided_slice %171 {offsets = [0, 0], sizes = [8, 96], strides = [1, 1]} : vector<8x128xf32> to vector<8x96xf32>
    %173 = arith.negf %172 : vector<8x96xf32>
    %174 = math.exp %173 : vector<8x96xf32>
    %cst_32 = arith.constant 1.000000e+00 : f32
    %175 = vector.broadcast %cst_32 : f32 to vector<8x96xf32>
    %176 = arith.addf %175, %174 : vector<8x96xf32>
    %177 = arith.divf %175, %176 : vector<8x96xf32>
    %178 = vector.extract_strided_slice %171 {offsets = [0, 96], sizes = [8, 32], strides = [1, 1]} : vector<8x128xf32> to vector<8x32xf32>
    %179 = math.tanh %178 : vector<8x32xf32>
    %180 = vector.extract_strided_slice %177 {offsets = [0, 0], sizes = [8, 32], strides = [1, 1]} : vector<8x96xf32> to vector<8x32xf32>
    %181 = vector.extract_strided_slice %177 {offsets = [0, 32], sizes = [8, 32], strides = [1, 1]} : vector<8x96xf32> to vector<8x32xf32>
    %182 = vector.extract_strided_slice %177 {offsets = [0, 64], sizes = [8, 32], strides = [1, 1]} : vector<8x96xf32> to vector<8x32xf32>
    %183 = arith.mulf %181, %146 : vector<8x32xf32>
    %184 = arith.mulf %180, %179 : vector<8x32xf32>
    %185 = arith.addf %183, %184 : vector<8x32xf32>
    %186 = math.tanh %185 : vector<8x32xf32>
    %187 = arith.mulf %182, %186 : vector<8x32xf32>
    %188 = tpu.concatenate %187, %168 in 1 : vector<8x32xf32>, vector<8x24xf32> -> vector<8x56xf32>
    %cst_33 = arith.constant dense<0.000000e+00> : vector<8x96xf32>
    %189 = tpu.matmul %188, %7, %cst_33 {dimension_numbers = #tpu.dot_dimension_numbers<[1], [0], [0], [1], [0, 0, 1, 1], [], []>} : vector<8x56xf32>, vector<56x96xf32>, vector<8x96xf32> -> vector<8x96xf32>
    %190 = vector.broadcast %8 : vector<1x96xf32> to vector<8x96xf32>
    %191 = arith.addf %189, %190 : vector<8x96xf32>
    %192 = vector.extract_strided_slice %191 {offsets = [0, 0], sizes = [8, 72], strides = [1, 1]} : vector<8x96xf32> to vector<8x72xf32>
    %193 = arith.negf %192 : vector<8x72xf32>
    %194 = math.exp %193 : vector<8x72xf32>
    %cst_34 = arith.constant 1.000000e+00 : f32
    %195 = vector.broadcast %cst_34 : f32 to vector<8x72xf32>
    %196 = arith.addf %195, %194 : vector<8x72xf32>
    %197 = arith.divf %195, %196 : vector<8x72xf32>
    %198 = vector.extract_strided_slice %191 {offsets = [0, 72], sizes = [8, 24], strides = [1, 1]} : vector<8x96xf32> to vector<8x24xf32>
    %199 = math.tanh %198 : vector<8x24xf32>
    %200 = vector.extract_strided_slice %197 {offsets = [0, 0], sizes = [8, 24], strides = [1, 1]} : vector<8x72xf32> to vector<8x24xf32>
    %201 = vector.extract_strided_slice %197 {offsets = [0, 24], sizes = [8, 24], strides = [1, 1]} : vector<8x72xf32> to vector<8x24xf32>
    %202 = vector.extract_strided_slice %197 {offsets = [0, 48], sizes = [8, 24], strides = [1, 1]} : vector<8x72xf32> to vector<8x24xf32>
    %203 = arith.mulf %201, %166 : vector<8x24xf32>
    %204 = arith.mulf %200, %199 : vector<8x24xf32>
    %205 = arith.addf %203, %204 : vector<8x24xf32>
    %206 = math.tanh %205 : vector<8x24xf32>
    %207 = arith.mulf %202, %206 : vector<8x24xf32>
    %c0_35 = arith.constant 0 : index
    %c0_36 = arith.constant 0 : index
    %208 = vector.load %arg8[%c0_35, %c0_36] : memref<24x12xf32, #tpu.memory_space<vmem>>, vector<24x12xf32>
    %cst_37 = arith.constant dense<0.000000e+00> : vector<8x12xf32>
    %209 = tpu.matmul %207, %208, %cst_37 {dimension_numbers = #tpu.dot_dimension_numbers<[1], [0], [0], [1], [0, 0, 1, 1], [], []>} : vector<8x24xf32>, vector<24x12xf32>, vector<8x12xf32> -> vector<8x12xf32>
    %c0_38 = arith.constant 0 : index
    %c0_39 = arith.constant 0 : index
    %210 = vector.load %arg9[%c0_38, %c0_39] : memref<1x12xf32, #tpu.memory_space<vmem>>, vector<1x12xf32>
    %211 = vector.broadcast %210 : vector<1x12xf32> to vector<8x12xf32>
    %212 = arith.addf %209, %211 : vector<8x12xf32>
    %cst_40 = arith.constant dense<0.000000e+00> : vector<12xf32>
    %213 = vector.multi_reduction <add>, %212, %cst_40 [0] : vector<8x12xf32> to vector<12xf32>
    %214 = vector.shape_cast %213 : vector<12xf32> to vector<1x12xf32>
    %cst_41 = arith.constant 8.000000e+00 : f32
    %215 = vector.broadcast %cst_41 : f32 to vector<1x12xf32>
    %216 = arith.divf %214, %215 : vector<1x12xf32>
    %217 = vector.broadcast %216 : vector<1x12xf32> to vector<8x12xf32>
    %218 = arith.subf %212, %217 : vector<8x12xf32>
    %219 = arith.mulf %218, %218 : vector<8x12xf32>
    %cst_42 = arith.constant dense<0.000000e+00> : vector<12xf32>
    %220 = vector.multi_reduction <add>, %219, %cst_42 [0] : vector<8x12xf32> to vector<12xf32>
    %221 = vector.shape_cast %220 : vector<12xf32> to vector<1x12xf32>
    %cst_43 = arith.constant 7.000000e+00 : f32
    %222 = vector.broadcast %cst_43 : f32 to vector<1x12xf32>
    %223 = arith.divf %221, %222 : vector<1x12xf32>
    %224 = vector.broadcast %216 : vector<1x12xf32> to vector<8x12xf32>
    %225 = arith.subf %212, %224 : vector<8x12xf32>
    %226 = math.rsqrt %223 : vector<1x12xf32>
    %227 = vector.broadcast %226 : vector<1x12xf32> to vector<8x12xf32>
    %228 = arith.mulf %225, %227 : vector<8x12xf32>
    %c0_44 = arith.constant 0 : index
    %c0_45 = arith.constant 0 : index
    %229 = vector.load %arg1[%c0_44, %c0_45] : memref<8x55xf32, #tpu.memory_space<vmem>>, vector<8x55xf32>
    %cst_46 = arith.constant 3.000000e-01 : f32
    %230 = vector.broadcast %cst_46 : f32 to vector<8x55xf32>
    %231 = arith.cmpf oge, %229, %230 : vector<8x55xf32>
    %232 = arith.extui %231 : vector<8x55xi1> to vector<8x55xi32>
    %233 = arith.sitofp %232 : vector<8x55xi32> to vector<8x55xf32>
    %c0_47 = arith.constant 0 : index
    %c0_48 = arith.constant 0 : index
    %234 = vector.load %arg2[%c0_47, %c0_48] : memref<8x12xf32, #tpu.memory_space<vmem>>, vector<8x12xf32>
    %cst_49 = arith.constant 3.000000e-01 : f32
    %235 = vector.broadcast %cst_49 : f32 to vector<8x12xf32>
    %236 = arith.cmpf oge, %234, %235 : vector<8x12xf32>
    %237 = arith.extui %236 : vector<8x12xi1> to vector<8x12xi32>
    %238 = arith.sitofp %237 : vector<8x12xi32> to vector<8x12xf32>
    %239 = arith.mulf %0, %233 : vector<8x55xf32>
    %240 = arith.mulf %228, %238 : vector<8x12xf32>
    %241 = tpu.concatenate %0, %228 in 1 : vector<8x55xf32>, vector<8x12xf32> -> vector<8x67xf32>
    %c0_50 = arith.constant 0 : index
    %c0_51 = arith.constant 0 : index
    %242 = vector.load %arg26[%c0_50, %c0_51] : memref<8x67xf32, #tpu.memory_space<vmem>>, vector<8x67xf32>
    tpu.vector_store %arg26[%c0_50, %c0_51], %241 {strides = array<i32>} : memref<8x67xf32, #tpu.memory_space<vmem>>, vector<8x67xf32>,
    %c0_52 = arith.constant 0 : index
    %c0_53 = arith.constant 0 : index
    %243 = vector.load %arg10[%c0_52, %c0_53] : memref<55x64xf32, #tpu.memory_space<vmem>>, vector<55x64xf32>
    %cst_54 = arith.constant dense<0.000000e+00> : vector<8x64xf32>
    %244 = tpu.matmul %239, %243, %cst_54 {dimension_numbers = #tpu.dot_dimension_numbers<[1], [0], [0], [1], [0, 0, 1, 1], [], []>} : vector<8x55xf32>, vector<55x64xf32>, vector<8x64xf32> -> vector<8x64xf32>
    %c0_55 = arith.constant 0 : index
    %c0_56 = arith.constant 0 : index
    %245 = vector.load %arg11[%c0_55, %c0_56] : memref<12x64xf32, #tpu.memory_space<vmem>>, vector<12x64xf32>
    %cst_57 = arith.constant dense<0.000000e+00> : vector<8x64xf32>
    %246 = tpu.matmul %240, %245, %cst_57 {dimension_numbers = #tpu.dot_dimension_numbers<[1], [0], [0], [1], [0, 0, 1, 1], [], []>} : vector<8x12xf32>, vector<12x64xf32>, vector<8x64xf32> -> vector<8x64xf32>
    %247 = arith.addf %244, %246 : vector<8x64xf32>
    %c0_58 = arith.constant 0 : index
    %c0_59 = arith.constant 0 : index
    %248 = vector.load %arg12[%c0_58, %c0_59] : memref<1x64xf32, #tpu.memory_space<vmem>>, vector<1x64xf32>
    %249 = vector.broadcast %248 : vector<1x64xf32> to vector<8x64xf32>
    %250 = arith.addf %247, %249 : vector<8x64xf32>
    %c0_60 = arith.constant 0 : index
    %c0_61 = arith.constant 0 : index
    %251 = vector.load %arg13[%c0_60, %c0_61] : memref<1x64xf32, #tpu.memory_space<vmem>>, vector<1x64xf32>
    %c0_62 = arith.constant 0 : index
    %c0_63 = arith.constant 0 : index
    %252 = vector.load %arg14[%c0_62, %c0_63] : memref<1x64xf32, #tpu.memory_space<vmem>>, vector<1x64xf32>
    %cst_64 = arith.constant dense<0.000000e+00> : vector<64xf32>
    %253 = vector.multi_reduction <add>, %250, %cst_64 [0] : vector<8x64xf32> to vector<64xf32>
    %254 = vector.shape_cast %253 : vector<64xf32> to vector<1x64xf32>
    %cst_65 = arith.constant 8.000000e+00 : f32
    %255 = vector.broadcast %cst_65 : f32 to vector<1x64xf32>
    %256 = arith.divf %254, %255 : vector<1x64xf32>
    %257 = vector.broadcast %256 : vector<1x64xf32> to vector<8x64xf32>
    %258 = arith.subf %250, %257 : vector<8x64xf32>
    %259 = arith.mulf %258, %258 : vector<8x64xf32>
    %cst_66 = arith.constant dense<0.000000e+00> : vector<64xf32>
    %260 = vector.multi_reduction <add>, %259, %cst_66 [0] : vector<8x64xf32> to vector<64xf32>
    %261 = vector.shape_cast %260 : vector<64xf32> to vector<1x64xf32>
    %cst_67 = arith.constant 8.000000e+00 : f32
    %262 = vector.broadcast %cst_67 : f32 to vector<1x64xf32>
    %263 = arith.divf %261, %262 : vector<1x64xf32>
    %264 = vector.broadcast %256 : vector<1x64xf32> to vector<8x64xf32>
    %265 = arith.subf %250, %264 : vector<8x64xf32>
    %266 = vector.broadcast %251 : vector<1x64xf32> to vector<8x64xf32>
    %267 = arith.mulf %266, %265 : vector<8x64xf32>
    %cst_68 = arith.constant 9.99999974E-6 : f32
    %268 = vector.broadcast %cst_68 : f32 to vector<1x64xf32>
    %269 = arith.addf %263, %268 : vector<1x64xf32>
    %270 = math.rsqrt %269 : vector<1x64xf32>
    %271 = vector.broadcast %270 : vector<1x64xf32> to vector<8x64xf32>
    %272 = arith.mulf %267, %271 : vector<8x64xf32>
    %273 = vector.broadcast %252 : vector<1x64xf32> to vector<8x64xf32>
    %274 = arith.addf %272, %273 : vector<8x64xf32>
    %cst_69 = arith.constant 0.000000e+00 : f32
    %275 = vector.broadcast %cst_69 : f32 to vector<8x64xf32>
    %276 = arith.cmpf oge, %274, %275 : vector<8x64xf32>
    %cst_70 = arith.constant 8.000000e-01 : f32
    %277 = vector.broadcast %cst_70 : f32 to vector<8x64xf32>
    %278 = arith.mulf %277, %274 : vector<8x64xf32>
    %279 = arith.select %276, %274, %278 : vector<8x64xi1>, vector<8x64xf32>
    %c0_71 = arith.constant 0 : index
    %c0_72 = arith.constant 0 : index
    %280 = vector.load %arg15[%c0_71, %c0_72] : memref<64x48xf32, #tpu.memory_space<vmem>>, vector<64x48xf32>
    %cst_73 = arith.constant dense<0.000000e+00> : vector<8x48xf32>
    %281 = tpu.matmul %279, %280, %cst_73 {dimension_numbers = #tpu.dot_dimension_numbers<[1], [0], [0], [1], [0, 0, 1, 1], [], []>} : vector<8x64xf32>, vector<64x48xf32>, vector<8x48xf32> -> vector<8x48xf32>
    %c0_74 = arith.constant 0 : index
    %c0_75 = arith.constant 0 : index
    %282 = vector.load %arg16[%c0_74, %c0_75] : memref<1x48xf32, #tpu.memory_space<vmem>>, vector<1x48xf32>
    %283 = vector.broadcast %282 : vector<1x48xf32> to vector<8x48xf32>
    %284 = arith.addf %281, %283 : vector<8x48xf32>
    %c0_76 = arith.constant 0 : index
    %c0_77 = arith.constant 0 : index
    %285 = vector.load %arg17[%c0_76, %c0_77] : memref<1x48xf32, #tpu.memory_space<vmem>>, vector<1x48xf32>
    %c0_78 = arith.constant 0 : index
    %c0_79 = arith.constant 0 : index
    %286 = vector.load %arg18[%c0_78, %c0_79] : memref<1x48xf32, #tpu.memory_space<vmem>>, vector<1x48xf32>
    %cst_80 = arith.constant dense<0.000000e+00> : vector<48xf32>
    %287 = vector.multi_reduction <add>, %284, %cst_80 [0] : vector<8x48xf32> to vector<48xf32>
    %288 = vector.shape_cast %287 : vector<48xf32> to vector<1x48xf32>
    %cst_81 = arith.constant 8.000000e+00 : f32
    %289 = vector.broadcast %cst_81 : f32 to vector<1x48xf32>
    %290 = arith.divf %288, %289 : vector<1x48xf32>
    %291 = vector.broadcast %290 : vector<1x48xf32> to vector<8x48xf32>
    %292 = arith.subf %284, %291 : vector<8x48xf32>
    %293 = arith.mulf %292, %292 : vector<8x48xf32>
    %cst_82 = arith.constant dense<0.000000e+00> : vector<48xf32>
    %294 = vector.multi_reduction <add>, %293, %cst_82 [0] : vector<8x48xf32> to vector<48xf32>
    %295 = vector.shape_cast %294 : vector<48xf32> to vector<1x48xf32>
    %cst_83 = arith.constant 8.000000e+00 : f32
    %296 = vector.broadcast %cst_83 : f32 to vector<1x48xf32>
    %297 = arith.divf %295, %296 : vector<1x48xf32>
    %298 = vector.broadcast %290 : vector<1x48xf32> to vector<8x48xf32>
    %299 = arith.subf %284, %298 : vector<8x48xf32>
    %300 = vector.broadcast %285 : vector<1x48xf32> to vector<8x48xf32>
    %301 = arith.mulf %300, %299 : vector<8x48xf32>
    %cst_84 = arith.constant 9.99999974E-6 : f32
    %302 = vector.broadcast %cst_84 : f32 to vector<1x48xf32>
    %303 = arith.addf %297, %302 : vector<1x48xf32>
    %304 = math.rsqrt %303 : vector<1x48xf32>
    %305 = vector.broadcast %304 : vector<1x48xf32> to vector<8x48xf32>
    %306 = arith.mulf %301, %305 : vector<8x48xf32>
    %307 = vector.broadcast %286 : vector<1x48xf32> to vector<8x48xf32>
    %308 = arith.addf %306, %307 : vector<8x48xf32>
    %cst_85 = arith.constant 0.000000e+00 : f32
    %309 = vector.broadcast %cst_85 : f32 to vector<8x48xf32>
    %310 = arith.cmpf oge, %308, %309 : vector<8x48xf32>
    %cst_86 = arith.constant 8.000000e-01 : f32
    %311 = vector.broadcast %cst_86 : f32 to vector<8x48xf32>
    %312 = arith.mulf %311, %308 : vector<8x48xf32>
    %313 = arith.select %310, %308, %312 : vector<8x48xi1>, vector<8x48xf32>
    %c0_87 = arith.constant 0 : index
    %c0_88 = arith.constant 0 : index
    %314 = vector.load %arg19[%c0_87, %c0_88] : memref<48x64xf32, #tpu.memory_space<vmem>>, vector<48x64xf32>
    %cst_89 = arith.constant dense<0.000000e+00> : vector<8x64xf32>
    %315 = tpu.matmul %313, %314, %cst_89 {dimension_numbers = #tpu.dot_dimension_numbers<[1], [0], [0], [1], [0, 0, 1, 1], [], []>} : vector<8x48xf32>, vector<48x64xf32>, vector<8x64xf32> -> vector<8x64xf32>
    %c0_90 = arith.constant 0 : index
    %c0_91 = arith.constant 0 : index
    %316 = vector.load %arg20[%c0_90, %c0_91] : memref<1x64xf32, #tpu.memory_space<vmem>>, vector<1x64xf32>
    %317 = vector.broadcast %316 : vector<1x64xf32> to vector<8x64xf32>
    %318 = arith.addf %315, %317 : vector<8x64xf32>
    %c0_92 = arith.constant 0 : index
    %c0_93 = arith.constant 0 : index
    %319 = vector.load %arg21[%c0_92, %c0_93] : memref<1x64xf32, #tpu.memory_space<vmem>>, vector<1x64xf32>
    %c0_94 = arith.constant 0 : index
    %c0_95 = arith.constant 0 : index
    %320 = vector.load %arg22[%c0_94, %c0_95] : memref<1x64xf32, #tpu.memory_space<vmem>>, vector<1x64xf32>
    %cst_96 = arith.constant dense<0.000000e+00> : vector<64xf32>
    %321 = vector.multi_reduction <add>, %318, %cst_96 [0] : vector<8x64xf32> to vector<64xf32>
    %322 = vector.shape_cast %321 : vector<64xf32> to vector<1x64xf32>
    %cst_97 = arith.constant 8.000000e+00 : f32
    %323 = vector.broadcast %cst_97 : f32 to vector<1x64xf32>
    %324 = arith.divf %322, %323 : vector<1x64xf32>
    %325 = vector.broadcast %324 : vector<1x64xf32> to vector<8x64xf32>
    %326 = arith.subf %318, %325 : vector<8x64xf32>
    %327 = arith.mulf %326, %326 : vector<8x64xf32>
    %cst_98 = arith.constant dense<0.000000e+00> : vector<64xf32>
    %328 = vector.multi_reduction <add>, %327, %cst_98 [0] : vector<8x64xf32> to vector<64xf32>
    %329 = vector.shape_cast %328 : vector<64xf32> to vector<1x64xf32>
    %cst_99 = arith.constant 8.000000e+00 : f32
    %330 = vector.broadcast %cst_99 : f32 to vector<1x64xf32>
    %331 = arith.divf %329, %330 : vector<1x64xf32>
    %332 = vector.broadcast %324 : vector<1x64xf32> to vector<8x64xf32>
    %333 = arith.subf %318, %332 : vector<8x64xf32>
    %334 = vector.broadcast %319 : vector<1x64xf32> to vector<8x64xf32>
    %335 = arith.mulf %334, %333 : vector<8x64xf32>
    %cst_100 = arith.constant 9.99999974E-6 : f32
    %336 = vector.broadcast %cst_100 : f32 to vector<1x64xf32>
    %337 = arith.addf %331, %336 : vector<1x64xf32>
    %338 = math.rsqrt %337 : vector<1x64xf32>
    %339 = vector.broadcast %338 : vector<1x64xf32> to vector<8x64xf32>
    %340 = arith.mulf %335, %339 : vector<8x64xf32>
    %341 = vector.broadcast %320 : vector<1x64xf32> to vector<8x64xf32>
    %342 = arith.addf %340, %341 : vector<8x64xf32>
    %cst_101 = arith.constant 0.000000e+00 : f32
    %343 = vector.broadcast %cst_101 : f32 to vector<8x64xf32>
    %344 = arith.cmpf oge, %342, %343 : vector<8x64xf32>
    %cst_102 = arith.constant 8.000000e-01 : f32
    %345 = vector.broadcast %cst_102 : f32 to vector<8x64xf32>
    %346 = arith.mulf %345, %342 : vector<8x64xf32>
    %347 = arith.select %344, %342, %346 : vector<8x64xi1>, vector<8x64xf32>
    %c0_103 = arith.constant 0 : index
    %c0_104 = arith.constant 0 : index
    %348 = vector.load %arg23[%c0_103, %c0_104] : memref<64x67xf32, #tpu.memory_space<vmem>>, vector<64x67xf32>
    %cst_105 = arith.constant dense<0.000000e+00> : vector<8x67xf32>
    %349 = tpu.matmul %347, %348, %cst_105 {dimension_numbers = #tpu.dot_dimension_numbers<[1], [0], [0], [1], [0, 0, 1, 1], [], []>} : vector<8x64xf32>, vector<64x67xf32>, vector<8x67xf32> -> vector<8x67xf32>
    %c0_106 = arith.constant 0 : index
    %c0_107 = arith.constant 0 : index
    %350 = vector.load %arg24[%c0_106, %c0_107] : memref<1x67xf32, #tpu.memory_space<vmem>>, vector<1x67xf32>
    %351 = vector.broadcast %350 : vector<1x67xf32> to vector<8x67xf32>
    %352 = arith.addf %349, %351 : vector<8x67xf32>
    %c0_108 = arith.constant 0 : index
    %c0_109 = arith.constant 0 : index
    %353 = vector.load %arg25[%c0_108, %c0_109] : memref<8x67xf32, #tpu.memory_space<vmem>>, vector<8x67xf32>
    tpu.vector_store %arg25[%c0_108, %c0_109], %352 {strides = array<i32>} : memref<8x67xf32, #tpu.memory_space<vmem>>, vector<8x67xf32>,
    return
  }
}

</mosaic_0001>

<bundles_post_ra>
// kernel: encoder_decoder_forward.1
= control target key start
LH: loop header
LB: loop body
LE: loop exit
PB: predicated region body
PF: predicated region fallthrough
CT: control target
= control target key end

     0   :  { %s4070_s0 = inlined_call_operand.vmem [shape: f32[8,55], index: 0, kind: input, shape index: {}]   ;;  %s4071_s1 = inlined_call_operand.hbm [shape: f32[8,55], index: 1, kind: input, shape index: {}]   ;;  %s4072_s2 = inlined_call_operand.hbm [shape: f32[8,12], index: 2, kind: input, shape index: {}]   ;;  %s4073_s3 = inlined_call_operand.vmem [shape: f32[55,640], index: 3, kind: input, shape index: {}]   ;;  %s4074_s4 = inlined_call_operand.vmem [shape: f32[1,640], index: 4, kind: input, shape index: {}]   ;;  %s4075_s5 = inlined_call_operand.hbm [shape: f32[32,128], index: 5, kind: input, shape index: {}]   ;;  %s4076_s6 = inlined_call_operand.hbm [shape: f32[56,96], index: 6, kind: input, shape index: {}]   ;;  %s4077_s7 = inlined_call_operand.vmem [shape: f32[1,96], index: 7, kind: input, shape index: {}]   ;;  %s4078_s8 = inlined_call_operand.vmem [shape: f32[24,12], index: 8, kind: input, shape index: {}]   ;;  %s4079_s9 = inlined_call_operand.hbm [shape: f32[1,12], index: 9, kind: input, shape index: {}]   ;;  %s4080_s10 = inlined_call_operand.hbm [shape: f32[55,64], index: 10, kind: input, shape index: {}]   ;;  %s4081_s11 = inlined_call_operand.hbm [shape: f32[12,64], index: 11, kind: input, shape index: {}]   ;;  %s4082_s12 = inlined_call_operand.hbm [shape: f32[1,64], index: 12, kind: input, shape index: {}]   ;;  %s4083_s13 = inlined_call_operand.hbm [shape: f32[1,64], index: 13, kind: input, shape index: {}]   ;;  %s4084_s14 = inlined_call_operand.hbm [shape: f32[1,64], index: 14, kind: input, shape index: {}]   ;;  %s4085_s15 = inlined_call_operand.vmem [shape: f32[64,48], index: 15, kind: input, shape index: {}]   ;;  %s4086_s16 = inlined_call_operand.hbm [shape: f32[1,48], index: 16, kind: input, shape index: {}]   ;;  %s4087_s17 = inlined_call_operand.hbm [shape: f32[1,48], index: 17, kind: input, shape index: {}]   ;;  %s4088_s18 = inlined_call_operand.hbm [shape: f32[1,48], index: 18, kind: input, shape index: {}]   ;;  %s4089_s19 = inlined_call_operand.hbm [shape: f32[48,64], index: 19, kind: input, shape index: {}]   ;;  %s4090_s20 = inlined_call_operand.hbm [shape: f32[1,64], index: 20, kind: input, shape index: {}]   ;;  %s4091_s21 = inlined_call_operand.hbm [shape: f32[1,64], index: 21, kind: input, shape index: {}]   ;;  %s4092_s22 = inlined_call_operand.hbm [shape: f32[1,64], index: 22, kind: input, shape index: {}]   ;;  %s4093_s23 = inlined_call_operand.vmem [shape: f32[64,67], index: 23, kind: input, shape index: {}]   ;;  %s4094_s24 = inlined_call_operand.hbm [shape: f32[1,67], index: 24, kind: input, shape index: {}]   ;;  %s4095_s25 = inlined_call_operand.hbm [shape: f32[8,67], index: 25, kind: output, shape index: {0}]   ;;  %s4096_s26 = inlined_call_operand.hbm [shape: f32[8,67], index: 26, kind: output, shape index: {1}]  }
   0x1   :  { %4100 = sst [smem:[#allocation46_spill]] %s4070_s0 }
   0x2   :  { %4101 = sst [smem:[#allocation47_spill]] %s4071_s1 }
   0x3   :  { %4102 = sst [smem:[#allocation48_spill]] %s4072_s2 }
   0x4   :  { %4103 = sst [smem:[#allocation49_spill]] %s4073_s3 }
   0x5   :  { %4104 = sst [smem:[#allocation50_spill]] %s4074_s4 }
   0x6   :  { %4105 = sst [smem:[#allocation51_spill]] %s4075_s5 }
   0x7   :  { %4106 = sst [smem:[#allocation52_spill]] %s4076_s6 }
   0x8   :  { %4107 = sst [smem:[#allocation53_spill]] %s4077_s7 }
   0x9   :  { %4108 = sst [smem:[#allocation54_spill]] %s4078_s8 }
   0xa   :  { %4109 = sst [smem:[#allocation55_spill]] %s4079_s9 }
   0xb   :  { %4110 = sst [smem:[#allocation56_spill]] %s4080_s10 }
   0xc   :  { %32 = vsyncpa [#allocation3], 0 }
   0xd   :  { %33 = vsyncpa [#allocation6], 0 }
   0xe   :  { %34 = vsyncpa [#allocation9], 0 }
   0xf   :  { %35 = vsyncpa [#allocation12], 0 }
  0x10   :  { %36 = vsyncpa [#allocation15], 0 }
  0x11   :  { %37 = vsyncpa [#allocation18], 0 }
  0x12   :  { %38 = vsyncpa [#allocation21], 0 }
  0x13   :  { %39 = vsyncpa [#allocation24], 0 }
  0x14   :  { %40 = vsyncpa [#allocation27], 0 }
  0x15   :  { %41 = vsyncpa [#allocation30], 0 }
  0x16   :  { %42 = vsyncpa [#allocation4], 0 }
  0x17   :  { %43 = vsyncpa [#allocation33], 0  ;;  %s3297_s27 = smov [#allocation5]  }
  0x18   :  { %s62_s3 = sshll.u32 %s3297_s27, 4  ;;  %s63_s3 = int_to_ptr.vmem [resolvable:$true] %s62_s3 }
  0x19   :  { %s2881_s7 = scalar_lea.vmem %s63_s3, 128  ;;  %p2886_p1 = scmp.lt.s32.totalorder %s63_s3, %s63_s3 }
  0x1a   :  { %p2882_p0 = scmp.ne.s32.totalorder %s63_s3, %s2881_s7  ;;  %p2887_p2 = scmp.lt.s32.totalorder %s2881_s7, %s2881_s7 }
  0x1c   :  { %p2888_p3 = por %p2887_p2, %p2886_p1 }
  0x1e   :  { %p2889_p4 = pnand %p2888_p3, %p2882_p0 }
  0x20   :  { %2892 = shalt.err (!%p2889_p4)
}
  0x21   :  { %s4111_s4 = sld [smem:[#allocation48_spill]]  ;;  %s3298_s29 = smov [#allocation8]  }
  0x22   :  { %s87_s0 = sshll.u32 %s3298_s29, 4  ;;  %s3299_s9 = smov [#allocation11]   ;;  %s88_s0 = int_to_ptr.vmem [resolvable:$true] %s87_s0 }
  0x23   :  { %s113_s30 = sshll.u32 %s3299_s9, 4  ;;  %s2901_s2 = scalar_lea.vmem %s88_s0, 896  ;;  %s114_s30 = int_to_ptr.vmem [resolvable:$true] %s113_s30 }
  0x24   :  { %p2902_p5 = scmp.ne.s32.totalorder %s88_s0, %s2901_s2  ;;  %p2906_p6 = scmp.lt.s32.totalorder %s88_s0, %s88_s0 }
  0x25   :  { %p2907_p7 = scmp.lt.s32.totalorder %s2901_s2, %s2901_s2 }
  0x27   :  { %65 = dma.hbm_to_vmem [thread:$0]  %s4111_s4, 128, %s63_s3, [#allocation6]  }
  0x28   :  { %p2908_p8 = por %p2907_p7, %p2906_p6 }
  0x2a   :  { %p2909_p9 = pnand %p2908_p8, %p2902_p5 }
  0x2c   :  { %2912 = shalt.err (!%p2909_p9)
}
  0x2d   :  { %s3300_s5 = smov 128   ;;  %s3301_s10 = smov 8  }
  0x2e   :  { %s4112_s27 = sld [smem:[#allocation52_spill]]  ;;  %s2921_s3 = scalar_lea.vmem %s114_s30, 896 }
  0x2f   :  { %p2922_p10 = scmp.ne.s32.totalorder %s114_s30, %s2921_s3  ;;  %p2926_p11 = scmp.lt.s32.totalorder %s114_s30, %s114_s30 }
  0x30   :  { %p2927_p12 = scmp.lt.s32.totalorder %s2921_s3, %s2921_s3 }
  0x32   :  { %p2928_p13 = por %p2927_p12, %p2926_p11 }
  0x34   :  { %93 = dma.hbm_to_vmem [thread:$0]  %s4112_s27, 896, %s88_s0, [#allocation9], %s3300_s5, %s3300_s5, %s3301_s10  }
  0x35   :  { %p2929_p0 = pnand %p2928_p13, %p2922_p10 }
  0x37   :  { %2932 = shalt.err (!%p2929_p0)
}
  0x38   :  { %s4113_s8 = sld [smem:[#allocation56_spill]]  ;;  %s3302_s4 = smov [#allocation14]  }
  0x39   :  { %s138_s29 = sshll.u32 %s3302_s4, 4  ;;  %s3303_s9 = smov [#allocation17]   ;;  %s139_s29 = int_to_ptr.vmem [resolvable:$true] %s138_s29 }
  0x3a   :  { %s158_s0 = sshll.u32 %s3303_s9, 4  ;;  %s2941_s2 = scalar_lea.vmem %s139_s29, 16  ;;  %s159_s0 = int_to_ptr.vmem [resolvable:$true] %s158_s0 }
  0x3b   :  { %p2942_p1 = scmp.ne.s32.totalorder %s139_s29, %s2941_s2  ;;  %s2945_s6 = scalar_lea.vmem %s139_s29, 32 }
  0x3c   :  { %p2946_p2 = scmp.lt.s32.totalorder %s139_s29, %s139_s29  ;;  %p2947_p3 = scmp.lt.s32.totalorder %s2945_s6, %s2941_s2 }
  0x3e   :  { %119 = dma.hbm_to_vmem [thread:$0]  %s4113_s8, 896, %s114_s30, [#allocation12], %s3300_s5, %s3300_s5, %s3301_s10  }
  0x3f   :  { %p2948_p4 = por %p2947_p3, %p2946_p2 }
  0x41   :  { %p2949_p5 = pnand %p2948_p4, %p2942_p1 }
  0x43   :  { %2952 = shalt.err (!%p2949_p5)
}
  0x44   :  { %141 = dma.hbm_to_vmem [thread:$0]  %s4082_s12, 16, %s139_s29, [#allocation15]  }
  0x45   :  { %s2961_s3 = scalar_lea.vmem %s159_s0, 16  ;;  %s2965_s30 = scalar_lea.vmem %s159_s0, 32 }
  0x46   :  { %p2962_p6 = scmp.ne.s32.totalorder %s159_s0, %s2961_s3  ;;  %p2966_p7 = scmp.lt.s32.totalorder %s159_s0, %s159_s0 }
  0x47   :  { %p2967_p8 = scmp.lt.s32.totalorder %s2965_s30, %s2961_s3 }
  0x49   :  { %p2968_p9 = por %p2967_p8, %p2966_p7 }
  0x4b   :  { %p2969_p10 = pnand %p2968_p9, %p2962_p6 }
  0x4d   :  { %2972 = shalt.err (!%p2969_p10)
}
  0x4e   :  { %161 = dma.hbm_to_vmem [thread:$0]  %s4084_s14, 16, %s159_s0, [#allocation18]  }
  0x4f   :  { %s3304_s8 = smov [#allocation20]   ;;  %s3305_s9 = smov [#allocation23]  }
  0x50   :  { %s180_s4 = sshll.u32 %s3304_s8, 4  ;;  %s199_s2 = sshll.u32 %s3305_s9, 4  ;;  %s181_s4 = int_to_ptr.vmem [resolvable:$true] %s180_s4  ;;  %s200_s2 = int_to_ptr.vmem [resolvable:$true] %s199_s2 }
  0x51   :  { %s2981_s6 = scalar_lea.vmem %s181_s4, 16  ;;  %s2985_s12 = scalar_lea.vmem %s181_s4, 32 }
  0x52   :  { %p2982_p11 = scmp.ne.s32.totalorder %s181_s4, %s2981_s6  ;;  %p2986_p12 = scmp.lt.s32.totalorder %s181_s4, %s181_s4 }
  0x53   :  { %p2987_p13 = scmp.lt.s32.totalorder %s2985_s12, %s2981_s6 }
  0x55   :  { %p2988_p0 = por %p2987_p13, %p2986_p12 }
  0x57   :  { %p2989_p1 = pnand %p2988_p0, %p2982_p11 }
  0x59   :  { %2992 = shalt.err (!%p2989_p1)
}
  0x5a   :  { %183 = dma.hbm_to_vmem [thread:$0]  %s4087_s17, 16, %s181_s4, [#allocation21]  }
  0x5b   :  { %s3001_s27 = scalar_lea.vmem %s200_s2, 768  ;;  %p3006_p3 = scmp.lt.s32.totalorder %s200_s2, %s200_s2 }
  0x5c   :  { %p3002_p2 = scmp.ne.s32.totalorder %s200_s2, %s3001_s27  ;;  %p3007_p4 = scmp.lt.s32.totalorder %s3001_s27, %s3001_s27 }
  0x5e   :  { %p3008_p5 = por %p3007_p4, %p3006_p3 }
  0x60   :  { %p3009_p6 = pnand %p3008_p5, %p3002_p2 }
  0x62   :  { %3012 = shalt.err (!%p3009_p6)
}
  0x63   :  { %205 = dma.hbm_to_vmem [thread:$0]  %s4089_s19, 768, %s200_s2, [#allocation24], %s3300_s5, %s3300_s5, %s3301_s10  }
  0x64   :  { %s3306_s3 = smov [#allocation26]   ;;  %s3307_s7 = smov [#allocation2]  }
  0x65   :  { %s222_s30 = sshll.u32 %s3306_s3, 4  ;;  %s52_s17 = sshll.u32 %s3307_s7, 4  ;;  %s223_s30 = int_to_ptr.vmem [resolvable:$true] %s222_s30  ;;  %s53_s17 = int_to_ptr.vmem [resolvable:$true] %s52_s17 }
  0x66   :  { %s3021_s28 = scalar_lea.vmem %s223_s30, 16  ;;  %s3025_s8 = scalar_lea.vmem %s223_s30, 32 }
  0x67   :  { %p3022_p7 = scmp.ne.s32.totalorder %s223_s30, %s3021_s28  ;;  %p3026_p8 = scmp.lt.s32.totalorder %s223_s30, %s223_s30 }
  0x68   :  { %p3027_p9 = scmp.lt.s32.totalorder %s3025_s8, %s3021_s28 }
  0x6a   :  { %p3028_p10 = por %p3027_p9, %p3026_p8 }
  0x6c   :  { %p3029_p11 = pnand %p3028_p10, %p3022_p7 }
  0x6e   :  { %3032 = shalt.err (!%p3029_p11)
}
  0x6f   :  { %225 = dma.hbm_to_vmem [thread:$0]  %s4091_s21, 16, %s223_s30, [#allocation27]  }
  0x70   :  { %s3041_s6 = scalar_lea.vmem %s53_s17, 128  ;;  %p3046_p13 = scmp.lt.s32.totalorder %s53_s17, %s53_s17 }
  0x71   :  { %p3042_p12 = scmp.ne.s32.totalorder %s53_s17, %s3041_s6  ;;  %p3047_p0 = scmp.lt.s32.totalorder %s3041_s6, %s3041_s6 }
  0x73   :  { %p3048_p1 = por %p3047_p0, %p3046_p13 }
  0x75   :  { %p3049_p2 = pnand %p3048_p1, %p3042_p12 }
  0x77   :  { %3052 = shalt.err (!%p3049_p2)
}
  0x78   :  { %s4114_s12 = sld [smem:[#allocation47_spill]]  ;;  %s3308_s29 = smov [#allocation7]  }
  0x79   :  { %s75_s1 = sshll.u32 %s3308_s29, 4  ;;  %s3309_s27 = smov [#allocation10]   ;;  %s76_s1 = int_to_ptr.vmem [resolvable:$true] %s75_s1 }
  0x7a   :  { %s104_s14 = sshll.u32 %s3309_s27, 4  ;;  %s3061_s0 = scalar_lea.vmem %s76_s1, 512  ;;  %s105_s14 = int_to_ptr.vmem [resolvable:$true] %s104_s14 }
  0x7b   :  { %p3062_p3 = scmp.ne.s32.totalorder %s76_s1, %s3061_s0  ;;  %p3066_p4 = scmp.lt.s32.totalorder %s76_s1, %s76_s1 }
  0x7c   :  { %p3067_p5 = scmp.lt.s32.totalorder %s3061_s0, %s3061_s0 }
  0x7e   :  { %55 = dma.hbm_to_vmem [thread:$0]  %s4114_s12, 128, %s53_s17, [#allocation3]  }
  0x7f   :  { %p3068_p6 = por %p3067_p5, %p3066_p4 }
  0x81   :  { %p3069_p7 = pnand %p3068_p6, %p3062_p3 }
  0x83   :  { %3072 = shalt.err (!%p3069_p7)
}
  0x84   :  { %s4115_s30 = sld [smem:[#allocation51_spill]]  ;;  %s3081_s7 = scalar_lea.vmem %s105_s14, 16 }
  0x85   :  { %p3082_p8 = scmp.ne.s32.totalorder %s105_s14, %s3081_s7  ;;  %s3085_s17 = scalar_lea.vmem %s105_s14, 32 }
  0x86   :  { %p3086_p9 = scmp.lt.s32.totalorder %s105_s14, %s105_s14  ;;  %p3087_p10 = scmp.lt.s32.totalorder %s3085_s17, %s3081_s7 }
  0x88   :  { %p3088_p11 = por %p3087_p10, %p3086_p9 }
  0x8a   :  { %81 = dma.hbm_to_vmem [thread:$0]  %s4115_s30, 512, %s76_s1, [#allocation6], %s3300_s5, %s3300_s5, %s3301_s10  }
  0x8b   :  { %p3089_p12 = pnand %p3088_p11, %p3082_p8 }
  0x8d   :  { %3092 = shalt.err (!%p3089_p12)
}
  0x8e   :  { %s4116_s4 = sld [smem:[#allocation55_spill]]  ;;  %s3310_s9 = smov [#allocation13]  }
  0x8f   :  { %s125_s6 = sshll.u32 %s3310_s9, 4  ;;  %s3311_s19 = smov [#allocation16]   ;;  %s126_s6 = int_to_ptr.vmem [resolvable:$true] %s125_s6 }
  0x90   :  { %s148_s2 = sshll.u32 %s3311_s19, 4  ;;  %s3101_s12 = scalar_lea.vmem %s126_s6, 256  ;;  %s149_s2 = int_to_ptr.vmem [resolvable:$true] %s148_s2 }
  0x91   :  { %p3102_p13 = scmp.ne.s32.totalorder %s126_s6, %s3101_s12  ;;  %p3106_p0 = scmp.lt.s32.totalorder %s126_s6, %s126_s6 }
  0x92   :  { %p3107_p1 = scmp.lt.s32.totalorder %s3101_s12, %s3101_s12 }
  0x94   :  { %107 = dma.hbm_to_vmem [thread:$0]  %s4116_s4, 16, %s105_s14, [#allocation9]  }
  0x95   :  { %p3108_p2 = por %p3107_p1, %p3106_p0 }
  0x97   :  { %p3109_p3 = pnand %p3108_p2, %p3102_p13 }
  0x99   :  { %3112 = shalt.err (!%p3109_p3)
}
  0x9a   :  { %131 = dma.hbm_to_vmem [thread:$0]  %s4081_s11, 256, %s126_s6, [#allocation12], %s3300_s5, %s3300_s5, %s3301_s10  }
  0x9b   :  { %s3121_s27 = scalar_lea.vmem %s149_s2, 16  ;;  %s3125_s14 = scalar_lea.vmem %s149_s2, 32 }
  0x9c   :  { %p3122_p4 = scmp.ne.s32.totalorder %s149_s2, %s3121_s27  ;;  %p3126_p5 = scmp.lt.s32.totalorder %s149_s2, %s149_s2 }
  0x9d   :  { %p3127_p6 = scmp.lt.s32.totalorder %s3125_s14, %s3121_s27 }
  0x9f   :  { %p3128_p7 = por %p3127_p6, %p3126_p5 }
  0xa1   :  { %p3129_p8 = pnand %p3128_p7, %p3122_p4 }
  0xa3   :  { %3132 = shalt.err (!%p3129_p8)
}
  0xa4   :  { %151 = dma.hbm_to_vmem [thread:$0]  %s4083_s13, 16, %s149_s2, [#allocation15]  }
  0xa5   :  { %s3312_s3 = smov [#allocation19]   ;;  %s3313_s7 = smov [#allocation22]  }
  0xa6   :  { %s170_s30 = sshll.u32 %s3312_s3, 4  ;;  %s190_s17 = sshll.u32 %s3313_s7, 4  ;;  %s171_s30 = int_to_ptr.vmem [resolvable:$true] %s170_s30  ;;  %s191_s17 = int_to_ptr.vmem [resolvable:$true] %s190_s17 }
  0xa7   :  { %s3141_s28 = scalar_lea.vmem %s171_s30, 16  ;;  %s3145_s11 = scalar_lea.vmem %s171_s30, 32 }
  0xa8   :  { %p3142_p9 = scmp.ne.s32.totalorder %s171_s30, %s3141_s28  ;;  %p3146_p10 = scmp.lt.s32.totalorder %s171_s30, %s171_s30 }
  0xa9   :  { %p3147_p11 = scmp.lt.s32.totalorder %s3145_s11, %s3141_s28 }
  0xab   :  { %p3148_p12 = por %p3147_p11, %p3146_p10 }
  0xad   :  { %p3149_p13 = pnand %p3148_p12, %p3142_p9 }
  0xaf   :  { %3152 = shalt.err (!%p3149_p13)
}
  0xb0   :  { %173 = dma.hbm_to_vmem [thread:$0]  %s4086_s16, 16, %s171_s30, [#allocation18]  }
  0xb1   :  { %s3161_s8 = scalar_lea.vmem %s191_s17, 16  ;;  %s3165_s13 = scalar_lea.vmem %s191_s17, 32 }
  0xb2   :  { %p3162_p0 = scmp.ne.s32.totalorder %s191_s17, %s3161_s8  ;;  %p3166_p1 = scmp.lt.s32.totalorder %s191_s17, %s191_s17 }
  0xb3   :  { %p3167_p2 = scmp.lt.s32.totalorder %s3165_s13, %s3161_s8 }
  0xb5   :  { %p3168_p3 = por %p3167_p2, %p3166_p1 }
  0xb7   :  { %p3169_p4 = pnand %p3168_p3, %p3162_p0 }
  0xb9   :  { %3172 = shalt.err (!%p3169_p4)
}
  0xba   :  { %193 = dma.hbm_to_vmem [thread:$0]  %s4088_s18, 16, %s191_s17, [#allocation21]  }
  0xbb   :  { %s3314_s6 = smov [#allocation25]   ;;  %s3315_s2 = smov [#allocation28]  }
  0xbc   :  { %s212_s19 = sshll.u32 %s3314_s6, 4  ;;  %s232_s12 = sshll.u32 %s3315_s2, 4  ;;  %s213_s19 = int_to_ptr.vmem [resolvable:$true] %s212_s19  ;;  %s233_s12 = int_to_ptr.vmem [resolvable:$true] %s232_s12 }
  0xbd   :  { %s3181_s29 = scalar_lea.vmem %s213_s19, 16  ;;  %s3185_s16 = scalar_lea.vmem %s213_s19, 32 }
  0xbe   :  { %p3182_p5 = scmp.ne.s32.totalorder %s213_s19, %s3181_s29  ;;  %p3186_p6 = scmp.lt.s32.totalorder %s213_s19, %s213_s19 }
  0xbf   :  { %p3187_p7 = scmp.lt.s32.totalorder %s3185_s16, %s3181_s29 }
  0xc1   :  { %p3188_p8 = por %p3187_p7, %p3186_p6 }
  0xc3   :  { %p3189_p9 = pnand %p3188_p8, %p3182_p5 }
  0xc5   :  { %3192 = shalt.err (!%p3189_p9)
}
  0xc6   :  { %215 = dma.hbm_to_vmem [thread:$0]  %s4090_s20, 16, %s213_s19, [#allocation24]  }
  0xc7   :  { %s3201_s14 = scalar_lea.vmem %s233_s12, 16  ;;  %s3205_s18 = scalar_lea.vmem %s233_s12, 32 }
  0xc8   :  { %p3202_p10 = scmp.ne.s32.totalorder %s233_s12, %s3201_s14  ;;  %p3206_p11 = scmp.lt.s32.totalorder %s233_s12, %s233_s12 }
  0xc9   :  { %p3207_p12 = scmp.lt.s32.totalorder %s3205_s18, %s3201_s14 }
  0xcb   :  { %p3208_p13 = por %p3207_p12, %p3206_p11 }
  0xcd   :  { %p3209_p0 = pnand %p3208_p13, %p3202_p10 }
  0xcf   :  { %3212 = shalt.err (!%p3209_p0)
}
  0xd0   :  { %235 = dma.hbm_to_vmem [thread:$0]  %s4092_s22, 16, %s233_s12, [#allocation27]  }
  0xd1   :  { %s3316_s3 = smov [#allocation29]  }
  0xd2   :  { %s244_s30 = sshll.u32 %s3316_s3, 4  ;;  %s245_s30 = int_to_ptr.vmem [resolvable:$true] %s244_s30 }
  0xd3   :  { %s3221_s7 = scalar_lea.vmem %s245_s30, 16  ;;  %s3225_s17 = scalar_lea.vmem %s245_s30, 32 }
  0xd4   :  { %p3222_p1 = scmp.ne.s32.totalorder %s245_s30, %s3221_s7  ;;  %p3226_p2 = scmp.lt.s32.totalorder %s245_s30, %s245_s30 }
  0xd5   :  { %p3227_p3 = scmp.lt.s32.totalorder %s3225_s17, %s3221_s7 }
  0xd7   :  { %p3228_p4 = por %p3227_p3, %p3226_p2 }
  0xd9   :  { %p3229_p5 = pnand %p3228_p4, %p3222_p1 }
  0xdb   :  { %3232 = shalt.err (!%p3229_p5)
}
  0xdc   :  { %247 = dma.hbm_to_vmem [thread:$0]  %s4094_s24, 16, %s245_s30, [#allocation30]  }
  0xdd   :  { %3273 = dma.done.wait [#allocation3], 128  }
  0xde   :  { %3274 = vsyncadd [#allocation3], 4294967168 }
  0xdf   :  { %3275 = dma.done.wait [#allocation6], 640  }
  0xe0   :  { %3276 = vsyncadd [#allocation6], 4294966656 }
  0xe1   :  { %3277 = dma.done.wait [#allocation9], 912  }
  0xe2   :  { %3278 = vsyncadd [#allocation9], 4294966384 }
  0xe3   :  { %3279 = dma.done.wait [#allocation12], 1152  }
  0xe4   :  { %3280 = vsyncadd [#allocation12], 4294966144 }
  0xe5   :  { %3281 = dma.done.wait [#allocation15], 32  }
  0xe6   :  { %3282 = vsyncadd [#allocation15], 4294967264 }
  0xe7   :  { %3283 = dma.done.wait [#allocation18], 32  }
  0xe8   :  { %3284 = vsyncadd [#allocation18], 4294967264 }
  0xe9   :  { %3285 = dma.done.wait [#allocation21], 32  }
  0xea   :  { %3286 = vsyncadd [#allocation21], 4294967264 }
  0xeb   :  { %3287 = dma.done.wait [#allocation24], 784  }
  0xec   :  { %3288 = vsyncadd [#allocation24], 4294966512 }
  0xed   :  { %3289 = dma.done.wait [#allocation27], 32  }
  0xee   :  { %3290 = vsyncadd [#allocation27], 4294967264 }
  0xef   :  { %3291 = dma.done.wait [#allocation30], 16  }
  0xf0   :  { %3292 = vsyncadd [#allocation30], 4294967280  ;;  %v3317_v0 = vmov 0.0   ;;  %vm369_vm0 = vcmask 1046528   ;;  %s4117_s11 = sld [smem:[#allocation49_spill]]  ;;  %vm365_vm1 = vcmask 449536   ;;  %v340_v34 = vlaneseq }
  0xf1   :  { %520 = vmatprep.mubr.f32.mxu1 %v3317_v0  ;;  %449 = vmatprep.mubr.f32.mxu0 %v3317_v0  ;;  %s4118_s8 = sld [smem:[#allocation46_spill]]  ;;  %v3624_v29 = vld [vmem:[#allocation7 + $0x18] sm:$0xff]  ;;  %v3632_v31 = vld [vmem:[#allocation7 + $0x10] sm:$0xff]  ;;  %v3638_v32 = vld [vmem:[#allocation7 + $0x8] sm:$0xff]  ;;  %vm3318_vm2 = vmmov 0   ;;  %s3319_s2 = smov 32  }
  0xf2   :  { %v3644_v33 = vld [vmem:[#allocation7] sm:$0xff]  ;;  %v3656_v35 = vshrl.u32 %v340_v34, 7  ;;  %s4119_s19 = sld [smem:[#allocation50_spill]]  ;;  %v3685_v58 = vld [vmem:[#allocation8 + $0x30] sm:$0xff]  ;;  %v3692_v60 = vld [vmem:[#allocation8 + $0x28] sm:$0xff]  ;;  %vm609_vm3 = vcmask 261120  }
  0xf3   :  { %v3695_v61 = vld [vmem:[#allocation8 + $0x20] sm:$0xff]  ;;  %v3703_v63 = vld [vmem:[#allocation8 + $0x18] sm:$0xff]  ;;  %vm719_vm4 = vcmask 457728   ;;  %s4120_s24 = sld [smem:[#allocation53_spill]]  ;;  %s3321_s5 = smov 56   ;;  %vm1642_vm5 = vcmask 195584  }
  0xf4   :  { %v342_v36 = vsub.s32 0, %v3656_v35  ;;  %s3322_s10 = smov 24   ;;  %s3323_s13 = smov 112   ;;  %vm1767_vm6 = vcmask 1043456   ;;  %vm1715_vm7 = vcmask 97280   ;;  %vm1753_vm10 = vcmask 547840  }
  0xf5   :  { %s4121_s6 = sld [smem:[#allocation54_spill]]  ;;  %s3324_s16 = smov 80   ;;  %vm1927_vm11 = vcmask 523264   ;;  %vm2056_vm13 = vcmask 392192  }
  0xf6   :  { %v336_v1 = vld [vmem:[%s4117_s11 + $0x108] sm:$0x7f]  ;;  %v335_v2 = vld [vmem:[%s4117_s11 + $0x100] sm:$0x7f]  ;;  %v330_v4 = vld [vmem:[%s4117_s11 + $0xd8] sm:$0xff]  ;;  %s3325_s1 = smov 55  }
  0xf7   :  { %v331_v3 = vld [vmem:[%s4117_s11 + $0xe0] sm:$0xff]  ;;  %2351 = vmatprep.subr.msk.mxu1 %vm369_vm0, %v336_v1  ;;  %v334_v5 = vld [vmem:[%s4117_s11 + $0xf8] sm:$0x7f]  ;;  %v333_v7 = vld [vmem:[%s4117_s11 + $0xf0] sm:$0x7f] }
  0xf8   :  { %2352 = vmatpush1.msk.msra.mxu1 %vm369_vm0, %v335_v2  ;;  %2348 = vmatprep.subr.msk.mxu0 %vm369_vm0, %v334_v5  ;;  %v326_v6 = vld [vmem:[%s4117_s11 + $0xb8] sm:$0xff]  ;;  %v329_v8 = vld [vmem:[%s4117_s11 + $0xd0] sm:$0xff]  ;;  %v328_v10 = vld [vmem:[%s4117_s11 + $0xc8] sm:$0xff] }
  0xf9   :  { %476 = vmatprep.subr.mxu1 %v331_v3  ;;  %2349 = vmatpush1.msk.msra.mxu0 %vm369_vm0, %v333_v7  ;;  %v325_v9 = vld [vmem:[%s4117_s11 + $0xb0] sm:$0xff]  ;;  %v324_v12 = vld [vmem:[%s4117_s11 + $0xa8] sm:$0xff]  ;;  %v323_v13 = vld [vmem:[%s4117_s11 + $0xa0] sm:$0xff] }
  0xfa   :  { %477 = vmatpush1.msra.mxu1 %v330_v4  ;;  %405 = vmatprep.subr.mxu0 %v329_v8  ;;  %v321_v11 = vld [vmem:[%s4117_s11 + $0x90] sm:$0xff]  ;;  %v320_v14 = vld [vmem:[%s4117_s11 + $0x88] sm:$0xff]  ;;  %v319_v15 = vld [vmem:[%s4117_s11 + $0x80] sm:$0xff] }
  0xfb   :  { %478 = vmatprep.subr.mxu1 %v326_v6  ;;  %406 = vmatpush1.msra.mxu0 %v328_v10  ;;  %v316_v16 = vld [vmem:[%s4117_s11 + $0x68] sm:$0xff]  ;;  %v318_v17 = vld [vmem:[%s4117_s11 + $0x78] sm:$0xff]  ;;  %v315_v18 = vld [vmem:[%s4117_s11 + $0x60] sm:$0xff] }
  0xfc   :  { %479 = vmatpush1.msra.mxu1 %v325_v9  ;;  %407 = vmatprep.subr.mxu0 %v324_v12  ;;  %v314_v19 = vld [vmem:[%s4117_s11 + $0x58] sm:$0xff]  ;;  %v311_v20 = vld [vmem:[%s4117_s11 + $0x40] sm:$0xff]  ;;  %v313_v21 = vld [vmem:[%s4117_s11 + $0x50] sm:$0xff] }
  0xfd   :  { %480 = vmatprep.subr.mxu1 %v321_v11  ;;  %408 = vmatpush1.msra.mxu0 %v323_v13  ;;  %v310_v22 = vld [vmem:[%s4117_s11 + $0x38] sm:$0xff]  ;;  %v309_v23 = vld [vmem:[%s4117_s11 + $0x30] sm:$0xff]  ;;  %v308_v25 = vld [vmem:[%s4117_s11 + $0x28] sm:$0xff] }
  0xfe   :  { %481 = vmatpush1.msra.mxu1 %v320_v14  ;;  %409 = vmatprep.subr.mxu0 %v319_v15  ;;  %v306_v24 = vld [vmem:[%s4117_s11 + $0x18] sm:$0xff]  ;;  %v305_v26 = vld [vmem:[%s4117_s11 + $0x10] sm:$0xff]  ;;  %v304_v27 = vld [vmem:[%s4117_s11 + $0x8] sm:$0xff]  ;;  %v346_v15 = vsub.s32 1, %v3656_v35 }
  0xff   :  { %482 = vmatprep.subr.mxu1 %v316_v16  ;;  %410 = vmatpush1.msra.mxu0 %v318_v17  ;;  %v3622_v28 = vld [vmem:[%s4118_s8] sm:$0xff]  ;;  %v337_v56 = vld [vmem:[%s4117_s11 + $0x110] sm:$0x7f]  ;;  %v332_v57 = vld [vmem:[%s4117_s11 + $0xe8] sm:$0xff] }
 0x100   :  { %483 = vmatpush1.msra.mxu1 %v315_v18  ;;  %411 = vmatprep.subr.mxu0 %v314_v19  ;;  %v303_v30 = vld [vmem:[%s4117_s11] sm:$0xff]  ;;  %v322_v62 = vld [vmem:[%s4117_s11 + $0x98] sm:$0xff]  ;;  %v317_v1 = vld [vmem:[%s4117_s11 + $0x70] sm:$0xff] }
 0x101   :  { %484 = vmatprep.subr.mxu1 %v311_v20  ;;  %412 = vmatpush1.msra.mxu0 %v313_v21  ;;  %v3662_v37 = vld [vmem:[%s4119_s19] sm:$0x1f]  ;;  %v312_v3 = vld [vmem:[%s4117_s11 + $0x48] sm:$0xff]  ;;  %v3724_v6 = vld [vmem:[#allocation8 + $0x8] sm:$0xff] }
 0x102   :  { %485 = vmatpush1.msra.mxu1 %v310_v22  ;;  %413 = vmatprep.subr.mxu0 %v309_v23  ;;  %v343_v38 = vrot.slane %v3662_v37, %v342_v36  ;;  %v327_v59 = vld [vmem:[%s4117_s11 + $0xc0] sm:$0xff]  ;;  %v3744_v7 = vld [vmem:[#allocation8] sm:$0xff]  ;;  %v347_v16 = vrot.slane %v3662_v37, %v346_v15 }
 0x103   :  { %486 = vmatprep.subr.mxu1 %v306_v24  ;;  %414 = vmatpush1.msra.mxu0 %v308_v25  ;;  %v3711_v2 = vld [vmem:[#allocation8 + $0x10] sm:$0xff] }
 0x104   :  { %487 = vmatpush1.msra.mxu1 %v305_v26  ;;  %415 = vmatprep.subr.mxu0 %v304_v27  ;;  %v307_v5 = vld [vmem:[%s4117_s11 + $0x20] sm:$0xff]  ;;  %s3320_s11 = smov 64  }
 0x105   :  { %2353 = vmatmul.mubr.msk.f32.vlgmr.msra.gmra.mxu1 %vm365_vm1, %v3622_v28  ;;  %2527 = vmatprep.subr.mxu1 %v3317_v0  ;;  %v3786_v18 = vld [vmem:[%s4120_s24] ss:$0 sm:$0xff] }
 0x106   :  { %2528 = vmatpush3.msra.mxu1 %v3624_v29  ;;  %416 = vmatpush1.msra.mxu0 %v303_v30 }
 0x107   :  { %2529 = vmatprep.subr.mxu1 %v3317_v0  ;;  %2350 = vmatmul.mubr.msk.f32.vlgmr.msra.gmra.mxu0 %vm365_vm1, %v3622_v28 }
 0x108   :  { %2530 = vmatpush3.msra.mxu1 %v3632_v31  ;;  %2535 = vmatprep.mubr.msk.f32.mxu1 %vm3318_vm2, %v3317_v0 }
 0x109   :  { %2531 = vmatprep.subr.mxu1 %v3317_v0  ;;  %2510 = vmatprep.subr.mxu0 %v3317_v0 }
 0x10a   :  { %2532 = vmatpush3.msra.mxu1 %v3638_v32  ;;  %2524 = vmatprep.mubr.msk.f32.mxu0 %vm3318_vm2, %v3317_v0 }
 0x10b   :  { %2533 = vmatprep.subr.mxu1 %v3317_v0  ;;  %2511 = vmatpush3.msk.msra.mxu0 %vm369_vm0, %v337_v56 }
 0x10c   :  { %2534 = vmatpush3.msra.mxu1 %v3644_v33  ;;  %2512 = vmatprep.subr.mxu0 %v3317_v0 }
 0x10d   :  { %2536 = vmatmul.mubr.f32.vlgmr.msra.gmra.mxu1 %v3317_v0  ;;  %2538 = vmatprep.subr.mxu1 %v3317_v0 }
 0x10e   :  { %2552 = vmatprep.mubr.msk.f32.mxu1 %vm3318_vm2, %v3317_v0  ;;  %2539 = vmatpush3.msra.mxu1 %v3685_v58 }
 0x10f   :  { %2513 = vmatpush3.msra.mxu0 %v332_v57  ;;  %2540 = vmatprep.subr.mxu1 %v3317_v0 }
 0x110   :  { %2514 = vmatprep.subr.mxu0 %v3317_v0  ;;  %2541 = vmatpush3.msra.mxu1 %v3692_v60 }
 0x111   :  { %2515 = vmatpush3.msra.mxu0 %v327_v59  ;;  %2542 = vmatprep.subr.mxu1 %v3317_v0 }
 0x112   :  { %2516 = vmatprep.subr.mxu0 %v3317_v0  ;;  %2543 = vmatpush3.msra.mxu1 %v3695_v61 }
 0x113   :  { %2517 = vmatpush3.msra.mxu0 %v322_v62  ;;  %2544 = vmatprep.subr.mxu1 %v3317_v0 }
 0x114   :  { %2518 = vmatprep.subr.mxu0 %v3317_v0  ;;  %2545 = vmatpush3.msra.mxu1 %v3703_v63 }
 0x115   :  { %2519 = vmatpush3.msra.mxu0 %v317_v1  ;;  %2546 = vmatprep.subr.mxu1 %v3317_v0 }
 0x116   :  { %2520 = vmatprep.subr.mxu0 %v3317_v0  ;;  %2547 = vmatpush3.msra.mxu1 %v3711_v2 }
 0x117   :  { %2521 = vmatpush3.msra.mxu0 %v312_v3  ;;  %2548 = vmatprep.subr.mxu1 %v3317_v0 }
 0x118   :  { %2522 = vmatprep.subr.mxu0 %v3317_v0  ;;  %2549 = vmatpush3.msra.mxu1 %v3724_v6 }
 0x119   :  { %2523 = vmatpush3.msra.mxu0 %v307_v5  ;;  %2550 = vmatprep.subr.mxu1 %v3317_v0 }
 0x11a   :  { %2525 = vmatmul.mubr.msk.f32.vlgmr.msra.gmra.mxu0 %vm365_vm1, %v3622_v28  ;;  %2555 = vmatprep.subr.mxu0 %v3317_v0 }
 0x11b   :  { %2556 = vmatpush3.msra.mxu0 %v3624_v29  ;;  %2563 = vmatprep.mubr.msk.f32.mxu0 %vm3318_vm2, %v3317_v0 }
 0x11c   :  { %2557 = vmatprep.subr.mxu0 %v3317_v0  ;;  %2551 = vmatpush3.msra.mxu1 %v3744_v7 }
 0x11d   :  { %2558 = vmatpush3.msra.mxu0 %v3632_v31  ;;  %2583 = vmatprep.subr.mxu1 %v3317_v0 }
 0x11e   :  { %2559 = vmatprep.subr.mxu0 %v3317_v0 }
 0x11f   :  { %2560 = vmatpush3.msra.mxu0 %v3638_v32 }
 0x120   :  { %2561 = vmatprep.subr.mxu0 %v3317_v0 }
 0x121   :  { %2562 = vmatpush3.msra.mxu0 %v3644_v33 }
 0x122   :  { %2566 = vmatprep.subr.mxu0 %v3317_v0 }
 0x1c5   :  { %v3665_v39 = vpop.f32.mrf.mxu1 }
 0x1c7   :  { %v451_v40 = vpop.f32.mrf.mxu0  ;;  %v3667_v42 = vpop.f32.mrf.mxu1 }
 0x1c8   :  { %v452_v41 = vadd.f32 %v451_v40, %v343_v38 }
 0x1c9   :  { %v453_v10 = vpop.f32.mrf.mxu0 }
 0x1ca   :  { %v454_v17 = vadd.f32 %v453_v10, %v347_v16 }
 0x1cd   :  { %v679_v43 = vpop.f32.mrf.mxu1 }
 0x1ce   :  { %v683_v44 = vadd.f32 %v679_v43, %v452_v41 }
 0x1cf   :  { %v2537_v45 = vpop.f32.mrf.mxu1 }
 0x1d0   :  { %2784 = vtanh.f32 %v683_v44  ;;  %v2356_v47 = vmul.f32 -1.442695, %v683_v44 }
 0x1d2   :  { %2786 = vpow2.f32 %v2356_v47 }
 0x1da   :  { %v3750_v11 = vpop.f32.mrf.mxu0 }
 0x1dc   :  { %v2526_v12 = vpop.f32.mrf.mxu0 }
 0x1dd   :  { %v2785_v46 = vpop.eup %2784 }
 0x1de   :  { %693 = vrot.lane.b32.xlu0 %v2785_v46, %s3319_s2 }
 0x1df   :  { %v2787_v48 = vpop.eup %2786 }
 0x1e0   :  { %v687_v49 = vadd.f32 1.0, %v2787_v48 }
 0x1e2   :  { %2788 = vrcp.f32 %v687_v49 }
 0x1ef   :  { %v3670_v50 = vpop.eup %2788 }
 0x1f0   :  { %v691_v53 = vmul.f32 0.0, %v3670_v50 }
 0x250   :  { %v694_v51 = vpop.permute.xlu0 %693 }
 0x251   :  { %v696_v52 = vmul.f32 %v3670_v50, %v694_v51 }
 0x253   :  { %698 = vrot.lane.b32.xlu0 %v696_v52, %s3319_s2 }
 0x2c5   :  { %v699_v54 = vpop.permute.xlu0 %698 }
 0x2c6   :  { %v3675_v55 = vadd.f32 %v699_v54, %v691_v53 }
 0x2c8   :  { %2790 = vtanh.f32 %v3675_v55 }
 0x2d5   :  { %v2791_v4 = vpop.eup %2790 }
 0x2d6   :  { %704 = vrot.lane.b32.xlu1 %v2791_v4, %s3319_s2  ;;  %v350_v4 = vsub.s32 2, %v3656_v35 }
 0x2d8   :  { %v351_v5 = vrot.slane %v3662_v37, %v350_v4 }
 0x348   :  { %v705_v8 = vpop.permute.xlu1 %704 }
 0x349   :  { %v707_v9 = vmul.f32 %v3670_v50, %v705_v8  ;;  %v523_v8 = vadd.f32 %v3665_v39, %v351_v5 }
 0x34b   :  { %709 = vrot.lane.b32.xlu1 %v707_v9, %s3320_s11 }
 0x3bd   :  { %v710_v13 = vpop.permute.xlu1 %709 }
 0x3be   :  { %v712_v14 = vsel %vm609_vm3, %v710_v13, 0.0  ;;  %2564 = vmatmul.mubr.msk.f32.vlgmr.msra.gmra.mxu0 %vm609_vm3, %v710_v13 }
 0x3bf   :  { %2553 = vmatmul.mubr.msk.f32.vlgmr.msra.gmra.mxu1 %vm719_vm4, %v712_v14  ;;  %2567 = vmatpush3.msra.mxu0 %v3685_v58 }
 0x3c0   :  { %2568 = vmatprep.subr.mxu0 %v3317_v0  ;;  %2584 = vmatpush3.msra.mxu1 %v3624_v29 }
 0x3c1   :  { %2569 = vmatpush3.msra.mxu0 %v3692_v60  ;;  %2585 = vmatprep.subr.mxu1 %v3317_v0 }
 0x3c2   :  { %2570 = vmatprep.subr.mxu0 %v3317_v0  ;;  %2586 = vmatpush3.msra.mxu1 %v3632_v31 }
 0x3c3   :  { %2571 = vmatpush3.msra.mxu0 %v3695_v61  ;;  %2587 = vmatprep.subr.mxu1 %v3317_v0 }
 0x3c4   :  { %2572 = vmatprep.subr.mxu0 %v3317_v0  ;;  %2588 = vmatpush3.msra.mxu1 %v3638_v32 }
 0x3c5   :  { %2573 = vmatpush3.msra.mxu0 %v3703_v63  ;;  %2589 = vmatprep.subr.mxu1 %v3317_v0 }
 0x3c6   :  { %2574 = vmatprep.subr.mxu0 %v3317_v0  ;;  %2590 = vmatpush3.msra.mxu1 %v3644_v33 }
 0x3c7   :  { %2575 = vmatpush3.msra.mxu0 %v3711_v2  ;;  %2591 = vmatprep.mubr.msk.f32.mxu1 %vm3318_vm2, %v3317_v0 }
 0x3c8   :  { %2576 = vmatprep.subr.mxu0 %v3317_v0  ;;  %2580 = vmatprep.mubr.msk.f32.mxu0 %vm3318_vm2, %v3317_v0 }
 0x3c9   :  { %2577 = vmatpush3.msra.mxu0 %v3724_v6  ;;  %2594 = vmatprep.subr.mxu1 %v3317_v0 }
 0x3ca   :  { %2578 = vmatprep.subr.mxu0 %v3317_v0 }
 0x3cb   :  { %2579 = vmatpush3.msra.mxu0 %v3744_v7 }
 0x3cc   :  { %2611 = vmatprep.subr.mxu0 %v3317_v0 }
 0x47e   :  { %v885_v19 = vpop.f32.mrf.mxu0 }
 0x47f   :  { %v889_v20 = vadd.f32 %v885_v19, %v454_v17  ;;  %v789_v21 = vpop.f32.mrf.mxu1 }
 0x480   :  { %v790_v22 = vadd.f32 %v3786_v18, %v789_v21  ;;  %v2565_v23 = vpop.f32.mrf.mxu0 }
 0x481   :  { %2792 = vtanh.f32 %v889_v20  ;;  %v2554_v24 = vpop.f32.mrf.mxu1  ;;  %v2361_v27 = vmul.f32 -1.442695, %v889_v20 }
 0x482   :  { %2794 = vtanh.f32 %v790_v22  ;;  %v2359_v28 = vmul.f32 -1.442695, %v790_v22 }
 0x483   :  { %2796 = vpow2.f32 %v2361_v27 }
 0x484   :  { %2798 = vpow2.f32 %v2359_v28 }
 0x48e   :  { %v2793_v25 = vpop.eup %2792 }
 0x48f   :  { %v2795_v26 = vpop.eup %2794  ;;  %899 = vrot.lane.b32.xlu1 %v2793_v25, %s3319_s2 }
 0x490   :  { %802 = vrot.lane.b32.xlu0 %v2795_v26, %s3321_s5  ;;  %v2797_v30 = vpop.eup %2796 }
 0x491   :  { %v2799_v34 = vpop.eup %2798  ;;  %v893_v36 = vadd.f32 1.0, %v2797_v30 }
 0x492   :  { %v796_v38 = vadd.f32 1.0, %v2799_v34 }
 0x493   :  { %2800 = vrcp.f32 %v893_v36 }
 0x494   :  { %2802 = vrcp.f32 %v796_v38 }
 0x4a0   :  { %v2801_v40 = vpop.eup %2800 }
 0x4a1   :  { %v2803_v43 = vpop.eup %2802  ;;  %v897_v47 = vmul.f32 %v2801_v40, %v3675_v55 }
 0x4a2   :  { %v800_v49 = vmul.f32 0.0, %v2803_v43 }
 0x501   :  { %v900_v41 = vpop.permute.xlu1 %899 }
 0x502   :  { %v902_v44 = vmul.f32 %v2801_v40, %v900_v41  ;;  %v803_v45 = vpop.permute.xlu0 %802 }
 0x503   :  { %v805_v46 = vmul.f32 %v2803_v43, %v803_v45 }
 0x504   :  { %904 = vrot.lane.b32.xlu1 %v902_v44, %s3319_s2 }
 0x505   :  { %807 = vrot.lane.b32.xlu0 %v805_v46, %s3322_s10 }
 0x576   :  { %v905_v48 = vpop.permute.xlu1 %904 }
 0x577   :  { %v3794_v50 = vadd.f32 %v905_v48, %v897_v47  ;;  %v808_v51 = vpop.permute.xlu0 %807 }
 0x578   :  { %v3796_v52 = vadd.f32 %v808_v51, %v800_v49 }
 0x579   :  { %2804 = vtanh.f32 %v3794_v50 }
 0x57a   :  { %2806 = vtanh.f32 %v3796_v52 }
 0x586   :  { %v2805_v53 = vpop.eup %2804 }
 0x587   :  { %v2807_v54 = vpop.eup %2806  ;;  %910 = vrot.lane.b32.xlu1 %v2805_v53, %s3319_s2 }
 0x588   :  { %813 = vrot.lane.b32.xlu0 %v2807_v54, %s3322_s10 }
 0x5f9   :  { %v911_v56 = vpop.permute.xlu1 %910 }
 0x5fa   :  { %v913_v57 = vmul.f32 %v2801_v40, %v911_v56  ;;  %v814_v55 = vpop.permute.xlu0 %813 }
 0x5fb   :  { %v816_v59 = vmul.f32 %v2803_v43, %v814_v55 }
 0x5fc   :  { %915 = vrot.lane.b32.xlu0 %v913_v57, %s3320_s11 }
 0x5fd   :  { %919 = vrot.lane.b32.xlu1 %v816_v59, %s3323_s13 }
 0x66e   :  { %v916_v62 = vpop.permute.xlu0 %915 }
 0x66f   :  { %v920_v1 = vpop.permute.xlu1 %919  ;;  %2592 = vmatmul.mubr.msk.f32.vlgmr.msra.gmra.mxu1 %vm609_vm3, %v916_v62 }
 0x670   :  { %v922_v3 = vsel %vm609_vm3, %v916_v62, %v920_v1  ;;  %2595 = vmatpush3.msra.mxu1 %v3685_v58  ;;  %2608 = vmatprep.mubr.msk.f32.mxu1 %vm3318_vm2, %v3317_v0 }
 0x671   :  { %2581 = vmatmul.mubr.msk.f32.vlgmr.msra.gmra.mxu0 %vm719_vm4, %v922_v3  ;;  %2596 = vmatprep.subr.mxu1 %v3317_v0 }
 0x672   :  { %2597 = vmatpush3.msra.mxu1 %v3692_v60  ;;  %2612 = vmatpush3.msra.mxu0 %v3624_v29 }
 0x673   :  { %2598 = vmatprep.subr.mxu1 %v3317_v0  ;;  %2613 = vmatprep.subr.mxu0 %v3317_v0 }
 0x674   :  { %2599 = vmatpush3.msra.mxu1 %v3695_v61  ;;  %2614 = vmatpush3.msra.mxu0 %v3632_v31 }
 0x675   :  { %2600 = vmatprep.subr.mxu1 %v3317_v0  ;;  %2615 = vmatprep.subr.mxu0 %v3317_v0 }
 0x676   :  { %2601 = vmatpush3.msra.mxu1 %v3703_v63  ;;  %2616 = vmatpush3.msra.mxu0 %v3638_v32 }
 0x677   :  { %2602 = vmatprep.subr.mxu1 %v3317_v0  ;;  %2617 = vmatprep.subr.mxu0 %v3317_v0 }
 0x678   :  { %2603 = vmatpush3.msra.mxu1 %v3711_v2  ;;  %2618 = vmatpush3.msra.mxu0 %v3644_v33 }
 0x679   :  { %2604 = vmatprep.subr.mxu1 %v3317_v0  ;;  %2619 = vmatprep.mubr.msk.f32.mxu0 %vm3318_vm2, %v3317_v0 }
 0x67a   :  { %2605 = vmatpush3.msra.mxu1 %v3724_v6  ;;  %2622 = vmatprep.subr.mxu0 %v3317_v0 }
 0x67b   :  { %2606 = vmatprep.subr.mxu1 %v3317_v0 }
 0x67c   :  { %2607 = vmatpush3.msra.mxu1 %v3744_v7 }
 0x67d   :  { %2639 = vmatprep.subr.mxu1 %v3317_v0 }
 0x72f   :  { %v1088_v9 = vpop.f32.mrf.mxu1 }
 0x730   :  { %v1092_v10 = vadd.f32 %v1088_v9, %v523_v8 }
 0x731   :  { %v992_v12 = vpop.f32.mrf.mxu0  ;;  %v2593_v13 = vpop.f32.mrf.mxu1 }
 0x732   :  { %2808 = vtanh.f32 %v1092_v10  ;;  %v993_v14 = vadd.f32 %v3786_v18, %v992_v12  ;;  %v2365_v19 = vmul.f32 -1.442695, %v1092_v10 }
 0x733   :  { %v2582_v15 = vpop.f32.mrf.mxu0 }
 0x734   :  { %2810 = vtanh.f32 %v993_v14  ;;  %v2363_v20 = vmul.f32 -1.442695, %v993_v14 }
 0x735   :  { %2812 = vpow2.f32 %v2365_v19 }
 0x736   :  { %2814 = vpow2.f32 %v2363_v20 }
 0x73f   :  { %v2809_v16 = vpop.eup %2808 }
 0x740   :  { %1102 = vrot.lane.b32.xlu1 %v2809_v16, %s3319_s2 }
 0x741   :  { %v2811_v17 = vpop.eup %2810 }
 0x742   :  { %1005 = vrot.lane.b32.xlu0 %v2811_v17, %s3321_s5  ;;  %v2813_v39 = vpop.eup %2812 }
 0x743   :  { %v2815_v21 = vpop.eup %2814  ;;  %v1096_v22 = vadd.f32 1.0, %v2813_v39 }
 0x744   :  { %v999_v23 = vadd.f32 1.0, %v2815_v21 }
 0x745   :  { %2816 = vrcp.f32 %v1096_v22 }
 0x746   :  { %2818 = vrcp.f32 %v999_v23 }
 0x752   :  { %v2817_v24 = vpop.eup %2816 }
 0x753   :  { %v2819_v27 = vpop.eup %2818  ;;  %v1100_v34 = vmul.f32 %v2817_v24, %v3794_v50 }
 0x754   :  { %v1003_v40 = vmul.f32 %v2819_v27, %v3796_v52 }
 0x7b2   :  { %v1103_v25 = vpop.permute.xlu1 %1102 }
 0x7b3   :  { %v1105_v26 = vmul.f32 %v2817_v24, %v1103_v25 }
 0x7b4   :  { %v1006_v28 = vpop.permute.xlu0 %1005 }
 0x7b5   :  { %1107 = vrot.lane.b32.xlu1 %v1105_v26, %s3319_s2  ;;  %v1008_v30 = vmul.f32 %v2819_v27, %v1006_v28 }
 0x7b7   :  { %1010 = vrot.lane.b32.xlu0 %v1008_v30, %s3322_s10 }
 0x827   :  { %v1108_v36 = vpop.permute.xlu1 %1107 }
 0x828   :  { %v3842_v38 = vadd.f32 %v1108_v36, %v1100_v34 }
 0x829   :  { %v1011_v41 = vpop.permute.xlu0 %1010 }
 0x82a   :  { %2820 = vtanh.f32 %v3842_v38  ;;  %v3846_v43 = vadd.f32 %v1011_v41, %v1003_v40 }
 0x82c   :  { %2822 = vtanh.f32 %v3846_v43 }
 0x837   :  { %v2821_v44 = vpop.eup %2820 }
 0x838   :  { %1113 = vrot.lane.b32.xlu1 %v2821_v44, %s3319_s2 }
 0x839   :  { %v2823_v45 = vpop.eup %2822 }
 0x83a   :  { %1016 = vrot.lane.b32.xlu0 %v2823_v45, %s3322_s10 }
 0x8aa   :  { %v1114_v46 = vpop.permute.xlu1 %1113 }
 0x8ab   :  { %v1116_v47 = vmul.f32 %v2817_v24, %v1114_v46 }
 0x8ac   :  { %v1017_v48 = vpop.permute.xlu0 %1016 }
 0x8ad   :  { %1118 = vrot.lane.b32.xlu0 %v1116_v47, %s3320_s11  ;;  %v1019_v49 = vmul.f32 %v2819_v27, %v1017_v48 }
 0x8af   :  { %1122 = vrot.lane.b32.xlu1 %v1019_v49, %s3323_s13 }
 0x91f   :  { %v1119_v50 = vpop.permute.xlu0 %1118 }
 0x920   :  { %2620 = vmatmul.mubr.msk.f32.vlgmr.msra.gmra.mxu0 %vm609_vm3, %v1119_v50 }
 0x921   :  { %2623 = vmatpush3.msra.mxu0 %v3685_v58  ;;  %2636 = vmatprep.mubr.msk.f32.mxu0 %vm3318_vm2, %v3317_v0  ;;  %v1123_v51 = vpop.permute.xlu1 %1122 }
 0x922   :  { %2624 = vmatprep.subr.mxu0 %v3317_v0  ;;  %v1125_v52 = vsel %vm609_vm3, %v1119_v50, %v1123_v51 }
 0x923   :  { %2625 = vmatpush3.msra.mxu0 %v3692_v60  ;;  %2609 = vmatmul.mubr.msk.f32.vlgmr.msra.gmra.mxu1 %vm719_vm4, %v1125_v52 }
 0x924   :  { %2626 = vmatprep.subr.mxu0 %v3317_v0  ;;  %2640 = vmatpush3.msra.mxu1 %v3624_v29  ;;  %v354_v29 = vsub.s32 3, %v3656_v35 }
 0x925   :  { %2627 = vmatpush3.msra.mxu0 %v3695_v61  ;;  %2641 = vmatprep.subr.mxu1 %v3317_v0 }
 0x926   :  { %2628 = vmatprep.subr.mxu0 %v3317_v0  ;;  %2642 = vmatpush3.msra.mxu1 %v3632_v31  ;;  %v355_v31 = vrot.slane %v3662_v37, %v354_v29 }
 0x927   :  { %2629 = vmatpush3.msra.mxu0 %v3703_v63  ;;  %2643 = vmatprep.subr.mxu1 %v3317_v0 }
 0x928   :  { %2630 = vmatprep.subr.mxu0 %v3317_v0  ;;  %2644 = vmatpush3.msra.mxu1 %v3638_v32  ;;  %v525_v32 = vadd.f32 %v3667_v42, %v355_v31 }
 0x929   :  { %2631 = vmatpush3.msra.mxu0 %v3711_v2  ;;  %2645 = vmatprep.subr.mxu1 %v3317_v0 }
 0x92a   :  { %2647 = vmatprep.mubr.msk.f32.mxu1 %vm3318_vm2, %v3317_v0  ;;  %2646 = vmatpush3.msra.mxu1 %v3644_v33 }
 0x92b   :  { %2632 = vmatprep.subr.mxu0 %v3317_v0  ;;  %2650 = vmatprep.subr.mxu1 %v3317_v0 }
 0x92c   :  { %2633 = vmatpush3.msra.mxu0 %v3724_v6 }
 0x92d   :  { %2634 = vmatprep.subr.mxu0 %v3317_v0 }
 0x92e   :  { %2635 = vmatpush3.msra.mxu0 %v3744_v7 }
 0x92f   :  { %2667 = vmatprep.subr.mxu0 %v3317_v0 }
 0x9e0   :  { %v1291_v53 = vpop.f32.mrf.mxu0 }
 0x9e1   :  { %v1295_v33 = vadd.f32 %v1291_v53, %v525_v32 }
 0x9e2   :  { %v2621_v54 = vpop.f32.mrf.mxu0 }
 0x9e3   :  { %2824 = vtanh.f32 %v1295_v33  ;;  %v1195_v56 = vpop.f32.mrf.mxu1  ;;  %v2369_v1 = vmul.f32 -1.442695, %v1295_v33 }
 0x9e4   :  { %v1196_v57 = vadd.f32 %v3786_v18, %v1195_v56 }
 0x9e5   :  { %v2610_v55 = vpop.f32.mrf.mxu1 }
 0x9e6   :  { %2826 = vtanh.f32 %v1196_v57  ;;  %v2367_v3 = vmul.f32 -1.442695, %v1196_v57 }
 0x9e7   :  { %2828 = vpow2.f32 %v2369_v1 }
 0x9e8   :  { %2830 = vpow2.f32 %v2367_v3 }
 0x9f0   :  { %v2825_v59 = vpop.eup %2824 }
 0x9f1   :  { %1305 = vrot.lane.b32.xlu1 %v2825_v59, %s3319_s2 }
 0x9f3   :  { %v2827_v62 = vpop.eup %2826 }
 0x9f4   :  { %1208 = vrot.lane.b32.xlu0 %v2827_v62, %s3321_s5  ;;  %v2829_v42 = vpop.eup %2828 }
 0x9f5   :  { %v1299_v4 = vadd.f32 1.0, %v2829_v42  ;;  %v2831_v5 = vpop.eup %2830 }
 0x9f6   :  { %v1202_v8 = vadd.f32 1.0, %v2831_v5 }
 0x9f7   :  { %2832 = vrcp.f32 %v1299_v4 }
 0x9f8   :  { %2834 = vrcp.f32 %v1202_v8 }
 0xa04   :  { %v2833_v9 = vpop.eup %2832 }
 0xa05   :  { %v2835_v13 = vpop.eup %2834  ;;  %v1303_v16 = vmul.f32 %v2833_v9, %v3842_v38 }
 0xa06   :  { %v1206_v20 = vmul.f32 %v2835_v13, %v3846_v43 }
 0xa63   :  { %v1306_v10 = vpop.permute.xlu1 %1305 }
 0xa64   :  { %v1308_v12 = vmul.f32 %v2833_v9, %v1306_v10 }
 0xa66   :  { %1310 = vrot.lane.b32.xlu1 %v1308_v12, %s3319_s2  ;;  %v1209_v14 = vpop.permute.xlu0 %1208 }
 0xa67   :  { %v1211_v15 = vmul.f32 %v2835_v13, %v1209_v14 }
 0xa69   :  { %1213 = vrot.lane.b32.xlu0 %v1211_v15, %s3322_s10 }
 0xad8   :  { %v1311_v17 = vpop.permute.xlu1 %1310 }
 0xad9   :  { %v3891_v19 = vadd.f32 %v1311_v17, %v1303_v16 }
 0xadb   :  { %2836 = vtanh.f32 %v3891_v19  ;;  %v1214_v39 = vpop.permute.xlu0 %1213 }
 0xadc   :  { %v3895_v21 = vadd.f32 %v1214_v39, %v1206_v20  ;;  %v1630_v39 = vld [vmem:[%s4121_s6 + $0x8] sm:$0xff] }
 0xade   :  { %2838 = vtanh.f32 %v3895_v21 }
 0xae8   :  { %v2837_v22 = vpop.eup %2836 }
 0xae9   :  { %1316 = vrot.lane.b32.xlu1 %v2837_v22, %s3319_s2 }
 0xaeb   :  { %v2839_v23 = vpop.eup %2838 }
 0xaec   :  { %1219 = vrot.lane.b32.xlu0 %v2839_v23, %s3322_s10 }
 0xb5b   :  { %v1317_v24 = vpop.permute.xlu1 %1316 }
 0xb5c   :  { %v1319_v25 = vmul.f32 %v2833_v9, %v1317_v24 }
 0xb5e   :  { %1321 = vrot.lane.b32.xlu0 %v1319_v25, %s3320_s11  ;;  %v1220_v26 = vpop.permute.xlu0 %1219 }
 0xb5f   :  { %v1222_v27 = vmul.f32 %v2835_v13, %v1220_v26  ;;  %v1763_v26 = vld [vmem:[#allocation13 + $0x8] sm:$0xf] }
 0xb61   :  { %1325 = vrot.lane.b32.xlu1 %v1222_v27, %s3323_s13  ;;  %v1762_v27 = vld [vmem:[#allocation13] sm:$0xff] }
 0xbd0   :  { %v1322_v28 = vpop.permute.xlu0 %1321 }
 0xbd1   :  { %2648 = vmatmul.mubr.msk.f32.vlgmr.msra.gmra.mxu1 %vm609_vm3, %v1322_v28 }
 0xbd2   :  { %2651 = vmatpush3.msra.mxu1 %v3685_v58  ;;  %2664 = vmatprep.mubr.msk.f32.mxu1 %vm3318_vm2, %v3317_v0  ;;  %v358_v58 = vsub.s32 4, %v3656_v35 }
 0xbd3   :  { %2652 = vmatprep.subr.mxu1 %v3317_v0  ;;  %v1326_v30 = vpop.permute.xlu1 %1325 }
 0xbd4   :  { %2653 = vmatpush3.msra.mxu1 %v3692_v60  ;;  %v1328_v34 = vsel %vm609_vm3, %v1322_v28, %v1326_v30  ;;  %v359_v60 = vrot.slane %v3662_v37, %v358_v58  ;;  %v2376_v28 = vld [vmem:[#allocation10] ss:$0 sm:$0xff] }
 0xbd5   :  { %2654 = vmatprep.subr.mxu1 %v3317_v0  ;;  %2637 = vmatmul.mubr.msk.f32.vlgmr.msra.gmra.mxu0 %vm719_vm4, %v1328_v34 }
 0xbd6   :  { %2655 = vmatpush3.msra.mxu1 %v3695_v61  ;;  %2673 = vmatprep.mubr.msk.f32.mxu0 %vm3318_vm2, %v3317_v0  ;;  %v594_v61 = vadd.f32 %v3750_v11, %v359_v60 }
 0xbd7   :  { %2656 = vmatprep.subr.mxu1 %v3317_v0 }
 0xbd8   :  { %2657 = vmatpush3.msra.mxu1 %v3703_v63 }
 0xbd9   :  { %2658 = vmatprep.subr.mxu1 %v3317_v0 }
 0xbda   :  { %2659 = vmatpush3.msra.mxu1 %v3711_v2 }
 0xbdb   :  { %2660 = vmatprep.subr.mxu1 %v3317_v0 }
 0xbdc   :  { %2661 = vmatpush3.msra.mxu1 %v3724_v6 }
 0xbdd   :  { %2662 = vmatprep.subr.mxu1 %v3317_v0 }
 0xbde   :  { %2663 = vmatpush3.msra.mxu1 %v3744_v7 }
 0xbdf   :  { %2676 = vmatprep.subr.mxu1 %v3317_v0 }
 0xc91   :  { %v1494_v63 = vpop.f32.mrf.mxu1 }
 0xc92   :  { %v1498_v36 = vadd.f32 %v1494_v63, %v594_v61 }
 0xc93   :  { %v2649_v38 = vpop.f32.mrf.mxu1 }
 0xc94   :  { %2840 = vtanh.f32 %v1498_v36  ;;  %v2373_v35 = vmul.f32 -1.442695, %v1498_v36 }
 0xc95   :  { %v1398_v2 = vpop.f32.mrf.mxu0 }
 0xc96   :  { %v1399_v40 = vadd.f32 %v3786_v18, %v1398_v2 }
 0xc97   :  { %v2638_v6 = vpop.f32.mrf.mxu0 }
 0xc98   :  { %2842 = vtanh.f32 %v1399_v40  ;;  %v2371_v37 = vmul.f32 -1.442695, %v1399_v40 }
 0xc99   :  { %2844 = vpow2.f32 %v2373_v35 }
 0xc9a   :  { %2846 = vpow2.f32 %v2371_v37 }
 0xca1   :  { %v2841_v41 = vpop.eup %2840 }
 0xca2   :  { %1508 = vrot.lane.b32.xlu1 %v2841_v41, %s3319_s2 }
 0xca5   :  { %v2843_v7 = vpop.eup %2842 }
 0xca6   :  { %1411 = vrot.lane.b32.xlu0 %v2843_v7, %s3321_s5  ;;  %v2845_v11 = vpop.eup %2844 }
 0xca7   :  { %v1502_v43 = vadd.f32 1.0, %v2845_v11  ;;  %v2847_v44 = vpop.eup %2846 }
 0xca8   :  { %v1405_v45 = vadd.f32 1.0, %v2847_v44 }
 0xca9   :  { %2848 = vrcp.f32 %v1502_v43 }
 0xcaa   :  { %2850 = vrcp.f32 %v1405_v45 }
 0xcb6   :  { %v2849_v46 = vpop.eup %2848 }
 0xcb7   :  { %v2851_v49 = vpop.eup %2850  ;;  %v1506_v52 = vmul.f32 %v2849_v46, %v3891_v19 }
 0xcb8   :  { %v1409_v32 = vmul.f32 %v2851_v49, %v3895_v21  ;;  %v1629_v21 = vld [vmem:[%s4121_s6] sm:$0xff] }
 0xd14   :  { %v1509_v47 = vpop.permute.xlu1 %1508 }
 0xd15   :  { %v1511_v48 = vmul.f32 %v2849_v46, %v1509_v47 }
 0xd17   :  { %1513 = vrot.lane.b32.xlu1 %v1511_v48, %s3319_s2  ;;  %v1742_v48 = vld [vmem:[#allocation5] sm:$0xff] }
 0xd18   :  { %v1412_v50 = vpop.permute.xlu0 %1411  ;;  %vm1743_vm8 = vcmp.ge.f32.partialorder %v1742_v48, 0.3  ;;  %v2097_v48 = vld [vmem:[#allocation23 + $0x10] sm:$0xff] }
 0xd19   :  { %v1414_v51 = vmul.f32 %v2851_v49, %v1412_v50  ;;  %v2379_v50 = vsel %vm1743_vm8, 1.0, %v3317_v0 }
 0xd1b   :  { %1416 = vrot.lane.b32.xlu0 %v1414_v51, %s3322_s10 }
 0xd89   :  { %v1514_v29 = vpop.permute.xlu1 %1513 }
 0xd8a   :  { %v1516_v31 = vadd.f32 %v1514_v29, %v1506_v52  ;;  %v1761_v29 = vld [vmem:[#allocation11 + $0x30] sm:$0x7f] }
 0xd8c   :  { %2852 = vtanh.f32 %v1516_v31  ;;  %v1760_v31 = vld [vmem:[#allocation11 + $0x28] sm:$0xff] }
 0xd8d   :  { %v1417_v53 = vpop.permute.xlu0 %1416 }
 0xd8e   :  { %v1419_v33 = vadd.f32 %v1417_v53, %v1409_v32  ;;  %v1738_v32 = vld [vmem:[#allocation2] sm:$0xff]  ;;  %v1759_v53 = vld [vmem:[#allocation11 + $0x20] sm:$0xff] }
 0xd8f   :  { %vm1739_vm9 = vcmp.ge.f32.partialorder %v1738_v32, 0.3 }
 0xd90   :  { %2854 = vtanh.f32 %v1419_v33 }
 0xd99   :  { %v2853_v54 = vpop.eup %2852 }
 0xd9a   :  { %1519 = vrot.lane.b32.xlu1 %v2853_v54, %s3319_s2  ;;  %v1757_v54 = vld [vmem:[#allocation11 + $0x10] sm:$0xff] }
 0xd9d   :  { %v2855_v56 = vpop.eup %2854 }
 0xd9e   :  { %1422 = vrot.lane.b32.xlu0 %v2855_v56, %s3322_s10  ;;  %v2378_v56 = vsel %vm1739_vm9, 1.0, %v3317_v0 }
 0xe0c   :  { %v1520_v57 = vpop.permute.xlu1 %1519 }
 0xe0d   :  { %v1522_v55 = vmul.f32 %v2849_v46, %v1520_v57  ;;  %v1756_v57 = vld [vmem:[#allocation11 + $0x8] sm:$0xff] }
 0xe0f   :  { %1524 = vrot.lane.b32.xlu0 %v1522_v55, %s3320_s11  ;;  %v1755_v55 = vld [vmem:[#allocation11] sm:$0xff] }
 0xe10   :  { %v1423_v59 = vpop.permute.xlu0 %1422 }
 0xe11   :  { %v1425_v62 = vmul.f32 %v2851_v49, %v1423_v59  ;;  %v2872_v59 = vld [vmem:[%s4118_s8] sm:$0xff] }
 0xe13   :  { %1528 = vrot.lane.b32.xlu1 %v1425_v62, %s3323_s13  ;;  %v1746_v62 = vmul.f32 %v2872_v59, %v2378_v56 }
 0xe81   :  { %v1525_v1 = vpop.permute.xlu0 %1524 }
 0xe85   :  { %v1529_v3 = vpop.permute.xlu1 %1528 }
 0xe86   :  { %v1531_v42 = vsel %vm609_vm3, %v1525_v1, %v1529_v3 }
 0xe87   :  { %2665 = vmatmul.mubr.msk.f32.vlgmr.msra.gmra.mxu1 %vm719_vm4, %v1531_v42  ;;  %v1973_v42 = vld [vmem:[%s4085_s15 + $0x38] sm:$0xff] }
 0xe88   :  { %2680 = vmatprep.mubr.msk.f32.mxu1 %vm3318_vm2, %v3317_v0  ;;  %2677 = vmatpush3.msk.msra.mxu1 %vm1767_vm6, %v1763_v26 }
 0xe89   :  { %2678 = vmatprep.subr.mxu1 %v3317_v0 }
 0xe8a   :  { %2679 = vmatpush3.msra.mxu1 %v1762_v27 }
 0xe8b   :  { %2683 = vmatprep.subr.mxu1 %v3317_v0 }
 0xf47   :  { %v1601_v4 = vpop.f32.mrf.mxu1 }
 0xf48   :  { %v1602_v5 = vadd.f32 %v3786_v18, %v1601_v4  ;;  %v1631_v18 = vld [vmem:[%s4121_s6 + $0x10] sm:$0xff] }
 0xf49   :  { %v2666_v8 = vpop.f32.mrf.mxu1  ;;  %2668 = vmatpush3.msra.mxu0 %v1631_v18  ;;  %v1972_v4 = vld [vmem:[%s4085_s15 + $0x30] sm:$0xff] }
 0xf4a   :  { %2856 = vtanh.f32 %v1602_v5  ;;  %v2375_v10 = vmul.f32 -1.442695, %v1602_v5  ;;  %2669 = vmatprep.subr.mxu0 %v3317_v0  ;;  %v1971_v5 = vld [vmem:[%s4085_s15 + $0x28] sm:$0xff]  ;;  %v1970_v8 = vld [vmem:[%s4085_s15 + $0x20] sm:$0xff] }
 0xf4b   :  { %2670 = vmatpush3.msra.mxu0 %v1630_v39 }
 0xf4c   :  { %2858 = vpow2.f32 %v2375_v10  ;;  %2671 = vmatprep.subr.mxu0 %v3317_v0  ;;  %v1968_v10 = vld [vmem:[%s4085_s15 + $0x10] sm:$0xff] }
 0xf4d   :  { %2672 = vmatpush3.msra.mxu0 %v1629_v21 }
 0xf4e   :  { %2700 = vmatprep.subr.mxu0 %v3317_v0 }
 0xf57   :  { %v2857_v9 = vpop.eup %2856 }
 0xf58   :  { %1614 = vrot.lane.b32.xlu0 %v2857_v9, %s3321_s5  ;;  %v1969_v9 = vld [vmem:[%s4085_s15 + $0x18] sm:$0xff] }
 0xf59   :  { %v2859_v12 = vpop.eup %2858 }
 0xf5a   :  { %v1608_v13 = vadd.f32 1.0, %v2859_v12  ;;  %v1967_v12 = vld [vmem:[%s4085_s15 + $0x8] sm:$0xff] }
 0xf5c   :  { %2860 = vrcp.f32 %v1608_v13  ;;  %v1966_v13 = vld [vmem:[%s4085_s15] sm:$0xff] }
 0xf69   :  { %v2861_v14 = vpop.eup %2860 }
 0xf6a   :  { %v1612_v17 = vmul.f32 %v2861_v14, %v1419_v33  ;;  %v1758_v33 = vld [vmem:[#allocation11 + $0x18] sm:$0xff] }
 0xfca   :  { %v1615_v15 = vpop.permute.xlu0 %1614 }
 0xfcb   :  { %v1617_v16 = vmul.f32 %v2861_v14, %v1615_v15 }
 0xfcd   :  { %1619 = vrot.lane.b32.xlu1 %v1617_v16, %s3322_s10 }
0x103f   :  { %v1620_v19 = vpop.permute.xlu1 %1619 }
0x1040   :  { %v1622_v20 = vadd.f32 %v1620_v19, %v1612_v17  ;;  %v2384_v17 = vld [vmem:[#allocation14] ss:$0 sm:$0xff] }
0x1042   :  { %2862 = vtanh.f32 %v1622_v20 }
0x104f   :  { %v2863_v22 = vpop.eup %2862 }
0x1050   :  { %1625 = vrot.lane.b32.xlu0 %v2863_v22, %s3322_s10 }
0x10c2   :  { %v1626_v23 = vpop.permute.xlu0 %1625 }
0x10c3   :  { %v1628_v24 = vmul.f32 %v2861_v14, %v1626_v23 }
0x10c5   :  { %1640 = vrot.lane.b32.xlu1 %v1628_v24, %s3324_s16 }
0x1137   :  { %v1641_v25 = vpop.permute.xlu1 %1640 }
0x1138   :  { %2674 = vmatmul.mubr.msk.f32.vlgmr.msra.gmra.mxu0 %vm1642_vm5, %v1641_v25 }
0x1139   :  { %2716 = vmatprep.mubr.msk.f32.mxu0 %vm3318_vm2, %v3317_v0  ;;  %2701 = vmatpush3.msra.mxu0 %v1973_v42 }
0x113a   :  { %2702 = vmatprep.subr.mxu0 %v3317_v0 }
0x113b   :  { %2703 = vmatpush3.msra.mxu0 %v1972_v4 }
0x113c   :  { %2704 = vmatprep.subr.mxu0 %v3317_v0 }
0x113d   :  { %2705 = vmatpush3.msra.mxu0 %v1971_v5 }
0x113e   :  { %2706 = vmatprep.subr.mxu0 %v3317_v0 }
0x113f   :  { %2707 = vmatpush3.msra.mxu0 %v1970_v8 }
0x1140   :  { %2708 = vmatprep.subr.mxu0 %v3317_v0 }
0x1141   :  { %2709 = vmatpush3.msra.mxu0 %v1969_v9 }
0x1142   :  { %2710 = vmatprep.subr.mxu0 %v3317_v0 }
0x1143   :  { %2711 = vmatpush3.msra.mxu0 %v1968_v10 }
0x1144   :  { %2712 = vmatprep.subr.mxu0 %v3317_v0 }
0x1145   :  { %2713 = vmatpush3.msra.mxu0 %v1967_v12 }
0x1146   :  { %2714 = vmatprep.subr.mxu0 %v3317_v0 }
0x1147   :  { %2715 = vmatpush3.msra.mxu0 %v1966_v13 }
0x1148   :  { %2734 = vmatprep.subr.mxu0 %v3317_v0 }
0x11f8   :  { %v1711_v30 = vpop.f32.mrf.mxu0 }
0x11f9   :  { %v1712_v34 = vadd.f32 %v2376_v28, %v1711_v30 }
0x11fa   :  { %v2675_v58 = vpop.f32.mrf.mxu0 }
0x11fb   :  { %v1716_v60 = vsel %vm1715_vm7, %v1712_v34, 0.0 }
0x11fc   :  { %v1717_v61 = vrot.slane %v1716_v60, 4 }
0x11fe   :  { %v1718_v63 = vadd.f32 %v1717_v61, %v1716_v60 }
0x1200   :  { %v1719_v36 = vrot.slane %v1718_v63, 2 }
0x1202   :  { %v1720_v38 = vadd.f32 %v1719_v36, %v1718_v63 }
0x1204   :  { %v1721_v2 = vrot.slane %v1720_v38, 1 }
0x1206   :  { %v1722_v40 = vadd.f32 %v1721_v2, %v1720_v38 }
0x1208   :  { %v1724_v6 = vmul.f32 0.125, %v1722_v40 }
0x120a   :  { %v1725_v41 = vsub.f32 %v1712_v34, %v1724_v6  ;;  %v2385_v6 = vld [vmem:[#allocation16] ss:$0 sm:$0xff] }
0x120c   :  { %v1726_v7 = vmul.f32 %v1725_v41, %v1725_v41 }
0x120e   :  { %v1727_v35 = vsel %vm1715_vm7, %v1726_v7, 0.0 }
0x120f   :  { %v1728_v37 = vrot.slane %v1727_v35, 4 }
0x1211   :  { %v1729_v11 = vadd.f32 %v1728_v37, %v1727_v35  ;;  %v2386_v35 = vld [vmem:[#allocation17] ss:$0 sm:$0xff] }
0x1213   :  { %v1730_v43 = vrot.slane %v1729_v11, 2 }
0x1215   :  { %v1731_v44 = vadd.f32 %v1730_v43, %v1729_v11 }
0x1217   :  { %v1732_v45 = vrot.slane %v1731_v44, 1 }
0x1219   :  { %v1733_v46 = vadd.f32 %v1732_v45, %v1731_v44  ;;  %v2100_v45 = vld [vmem:[#allocation23 + $0x28] sm:$0xff] }
0x121b   :  { %v1735_v47 = vmul.f32 0.14285715, %v1733_v46  ;;  %v2099_v46 = vld [vmem:[#allocation23 + $0x20] sm:$0xff] }
0x121d   :  { %2864 = vrsqrt.f32 %v1735_v47  ;;  %v2098_v47 = vld [vmem:[#allocation23 + $0x18] sm:$0xff] }
0x122a   :  { %v2865_v49 = vpop.eup %2864 }
0x122b   :  { %v1737_v51 = vmul.f32 %v2865_v49, %v1725_v41  ;;  %v2096_v49 = vld [vmem:[#allocation23 + $0x8] sm:$0xff] }
0x122d   :  { %1749 = vrot.lane.b32.xlu0 %v1737_v51, %s3325_s1  ;;  %v1747_v52 = vmul.f32 %v2379_v50, %v1737_v51  ;;  %v2095_v50 = vld [vmem:[#allocation23] sm:$0xff]  ;;  %v2387_v51 = vld [vmem:[#allocation19] ss:$0 sm:$0xff] }
0x122f   :  { %2681 = vmatmul.mubr.msk.f32.vlgmr.msra.gmra.mxu1 %vm1715_vm7, %v1747_v52 }
0x1230   :  { %2684 = vmatpush3.msk.msra.mxu1 %vm369_vm0, %v1761_v29  ;;  %2697 = vmatprep.mubr.msk.f32.mxu1 %vm3318_vm2, %v3317_v0 }
0x1231   :  { %2685 = vmatprep.subr.mxu1 %v3317_v0 }
0x1232   :  { %2686 = vmatpush3.msra.mxu1 %v1760_v31 }
0x1233   :  { %2687 = vmatprep.subr.mxu1 %v3317_v0 }
0x1234   :  { %2688 = vmatpush3.msra.mxu1 %v1759_v53 }
0x1235   :  { %2689 = vmatprep.subr.mxu1 %v3317_v0 }
0x1236   :  { %2690 = vmatpush3.msra.mxu1 %v1758_v33 }
0x1237   :  { %2691 = vmatprep.subr.mxu1 %v3317_v0 }
0x1238   :  { %2692 = vmatpush3.msra.mxu1 %v1757_v54 }
0x1239   :  { %2693 = vmatprep.subr.mxu1 %v3317_v0 }
0x123a   :  { %2694 = vmatpush3.msra.mxu1 %v1756_v57 }
0x123b   :  { %2695 = vmatprep.subr.mxu1 %v3317_v0 }
0x123c   :  { %2696 = vmatpush3.msra.mxu1 %v1755_v55 }
0x123d   :  { %2698 = vmatmul.mubr.msk.f32.vlgmr.msra.gmra.mxu1 %vm365_vm1, %v1746_v62  ;;  %2719 = vmatprep.subr.mxu1 %v3317_v0 }
0x123e   :  { %2731 = vmatprep.mubr.msk.f32.mxu1 %vm3318_vm2, %v3317_v0  ;;  %2720 = vmatpush3.msra.mxu1 %v2100_v45 }
0x123f   :  { %2721 = vmatprep.subr.mxu1 %v3317_v0 }
0x1240   :  { %2722 = vmatpush3.msra.mxu1 %v2099_v46 }
0x1241   :  { %2723 = vmatprep.subr.mxu1 %v3317_v0 }
0x1242   :  { %2724 = vmatpush3.msra.mxu1 %v2098_v47 }
0x1243   :  { %2725 = vmatprep.subr.mxu1 %v3317_v0 }
0x1244   :  { %2726 = vmatpush3.msra.mxu1 %v2097_v48 }
0x1245   :  { %2727 = vmatprep.subr.mxu1 %v3317_v0 }
0x1246   :  { %2728 = vmatpush3.msra.mxu1 %v2096_v49  ;;  %v2393_v49 = vld [vmem:[#allocation26] ss:$0 sm:$0xff] }
0x1247   :  { %2729 = vmatprep.subr.mxu1 %v3317_v0 }
0x1248   :  { %2730 = vmatpush3.msra.mxu1 %v2095_v50 }
0x129f   :  { %v1750_v1 = vpop.permute.xlu0 %1749 }
0x12a0   :  { %v1752_v3 = vsel %vm365_vm1, %v2872_v59, %v1750_v1 }
0x12a1   :  { %1754 = vst.msk [vmem:[#allocation32] sm:$0xff] %vm1753_vm10, %v1752_v3 }
0x12ef   :  { %v1837_v14 = vpop.f32.mrf.mxu1 }
0x12f1   :  { %v2682_v15 = vpop.f32.mrf.mxu1 }
0x12fd   :  { %v1913_v16 = vpop.f32.mrf.mxu1 }
0x12fe   :  { %v1914_v19 = vadd.f32 %v1913_v16, %v1837_v14  ;;  %v2389_v14 = vld [vmem:[#allocation20] ss:$0 sm:$0xff] }
0x12ff   :  { %v2699_v20 = vpop.f32.mrf.mxu1 }
0x1300   :  { %v1924_v18 = vadd.f32 %v2384_v17, %v1914_v19  ;;  %v2390_v17 = vld [vmem:[#allocation22] ss:$0 sm:$0xff] }
0x1302   :  { %v1928_v39 = vsel %vm1927_vm11, %v1924_v18, 0.0 }
0x1303   :  { %v1929_v21 = vrot.slane %v1928_v39, 4 }
0x1305   :  { %v1930_v22 = vadd.f32 %v1929_v21, %v1928_v39  ;;  %v2228_v21 = vld [vmem:[%s4093_s23 + $0x38] sm:$0xff] }
0x1307   :  { %v1931_v23 = vrot.slane %v1930_v22, 2 }
0x1309   :  { %v1932_v24 = vadd.f32 %v1931_v23, %v1930_v22  ;;  %v2227_v22 = vld [vmem:[%s4093_s23 + $0x30] sm:$0xff]  ;;  %v2226_v23 = vld [vmem:[%s4093_s23 + $0x28] sm:$0xff] }
0x130b   :  { %v1933_v25 = vrot.slane %v1932_v24, 1 }
0x130d   :  { %v1934_v26 = vadd.f32 %v1933_v25, %v1932_v24  ;;  %v2225_v24 = vld [vmem:[%s4093_s23 + $0x20] sm:$0xff]  ;;  %v2224_v25 = vld [vmem:[%s4093_s23 + $0x18] sm:$0xff] }
0x130f   :  { %v1935_v27 = vmul.f32 0.125, %v1934_v26  ;;  %v2223_v26 = vld [vmem:[%s4093_s23 + $0x10] sm:$0xff] }
0x1311   :  { %v1936_v28 = vsub.f32 %v1924_v18, %v1935_v27  ;;  %v2222_v27 = vld [vmem:[%s4093_s23 + $0x8] sm:$0xff] }
0x1313   :  { %v1937_v30 = vmul.f32 %v1936_v28, %v1936_v28  ;;  %v1952_v41 = vmul.f32 %v2385_v6, %v1936_v28  ;;  %v2221_v28 = vld [vmem:[%s4093_s23] sm:$0xff]  ;;  %s3326_s23 = smov [#allocation32]  }
0x1314   :  { %s2326_s3 = sshll.u32 %s3326_s23, 4  ;;  %s2327_s3 = int_to_ptr.vmem [resolvable:$true] %s2326_s3 }
0x1315   :  { %v1938_v34 = vsel %vm1927_vm11, %v1937_v30, 0.0  ;;  %v2391_v30 = vld [vmem:[#allocation25] ss:$0 sm:$0xff]  ;;  %s3233_s30 = scalar_lea.vmem %s2327_s3, 128  ;;  %p3238_p7 = scmp.lt.s32.totalorder %s2327_s3, %s2327_s3 }
0x1316   :  { %v1939_v58 = vrot.slane %v1938_v34, 4  ;;  %p3234_p6 = scmp.ne.s32.totalorder %s2327_s3, %s3233_s30  ;;  %p3239_p8 = scmp.lt.s32.totalorder %s3233_s30, %s3233_s30 }
0x1318   :  { %v1940_v60 = vadd.f32 %v1939_v58, %v1938_v34  ;;  %p3240_p9 = por %p3239_p8, %p3238_p7 }
0x131a   :  { %v1941_v61 = vrot.slane %v1940_v60, 2  ;;  %p3241_p10 = pnand %p3240_p9, %p3234_p6 }
0x131c   :  { %v1942_v63 = vadd.f32 %v1941_v61, %v1940_v60 }
0x131e   :  { %v1943_v36 = vrot.slane %v1942_v63, 1 }
0x1320   :  { %v1944_v38 = vadd.f32 %v1943_v36, %v1942_v63 }
0x1322   :  { %v1945_v2 = vmul.f32 0.125, %v1944_v38 }
0x1324   :  { %v1953_v40 = vadd.f32 1e-05, %v1945_v2 }
0x1326   :  { %2866 = vrsqrt.f32 %v1953_v40 }
0x1333   :  { %v2867_v7 = vpop.eup %2866 }
0x1334   :  { %v1955_v37 = vmul.f32 %v2867_v7, %v1952_v41 }
0x1336   :  { %v1962_v11 = vadd.f32 %v2386_v35, %v1955_v37 }
0x1338   :  { %vm1963_vm12 = vcmp.ge.f32.partialorder %v1962_v11, 0.0  ;;  %v1964_v43 = vmul.f32 0.8, %v1962_v11 }
0x133a   :  { %v1965_v44 = vsel %vm1963_vm12, %v1962_v11, %v1964_v43 }
0x133b   :  { %2717 = vmatmul.mubr.msk.f32.vlgmr.msra.gmra.mxu0 %vm1927_vm11, %v1965_v44 }
0x133c   :  { %2750 = vmatprep.mubr.msk.f32.mxu0 %vm3318_vm2, %v3317_v0  ;;  %2735 = vmatpush3.msra.mxu0 %v2228_v21 }
0x133d   :  { %2736 = vmatprep.subr.mxu0 %v3317_v0 }
0x133e   :  { %2737 = vmatpush3.msra.mxu0 %v2227_v22 }
0x133f   :  { %2738 = vmatprep.subr.mxu0 %v3317_v0 }
0x1340   :  { %2739 = vmatpush3.msra.mxu0 %v2226_v23 }
0x1341   :  { %2740 = vmatprep.subr.mxu0 %v3317_v0 }
0x1342   :  { %2741 = vmatpush3.msra.mxu0 %v2225_v24 }
0x1343   :  { %2742 = vmatprep.subr.mxu0 %v3317_v0 }
0x1344   :  { %2743 = vmatpush3.msra.mxu0 %v2224_v25 }
0x1345   :  { %2744 = vmatprep.subr.mxu0 %v3317_v0 }
0x1346   :  { %2745 = vmatpush3.msra.mxu0 %v2223_v26 }
0x1347   :  { %2746 = vmatprep.subr.mxu0 %v3317_v0 }
0x1348   :  { %2747 = vmatpush3.msra.mxu0 %v2222_v27 }
0x1349   :  { %2748 = vmatprep.subr.mxu0 %v3317_v0 }
0x134a   :  { %2749 = vmatpush3.msra.mxu0 %v2221_v28 }
0x13fb   :  { %v2050_v52 = vpop.f32.mrf.mxu0 }
0x13fc   :  { %v2051_v29 = vadd.f32 %v2387_v51, %v2050_v52  ;;  %v2394_v52 = vld [vmem:[#allocation28] ss:$0 sm:$0xff] }
0x13fd   :  { %v2718_v31 = vpop.f32.mrf.mxu0 }
0x13fe   :  { %v2057_v32 = vsel %vm2056_vm13, %v2051_v29, 0.0 }
0x13ff   :  { %v2058_v53 = vrot.slane %v2057_v32, 4 }
0x1401   :  { %v2059_v33 = vadd.f32 %v2058_v53, %v2057_v32 }
0x1403   :  { %v2060_v54 = vrot.slane %v2059_v33, 2 }
0x1405   :  { %v2061_v56 = vadd.f32 %v2060_v54, %v2059_v33 }
0x1407   :  { %v2062_v57 = vrot.slane %v2061_v56, 1 }
0x1409   :  { %v2063_v55 = vadd.f32 %v2062_v57, %v2061_v56 }
0x140b   :  { %v2064_v59 = vmul.f32 0.125, %v2063_v55 }
0x140d   :  { %v2065_v62 = vsub.f32 %v2051_v29, %v2064_v59 }
0x140f   :  { %v2066_v1 = vmul.f32 %v2065_v62, %v2065_v62  ;;  %v2081_v15 = vmul.f32 %v2389_v14, %v2065_v62 }
0x1411   :  { %v2067_v3 = vsel %vm2056_vm13, %v2066_v1, 0.0 }
0x1412   :  { %v2068_v42 = vrot.slane %v2067_v3, 4 }
0x1414   :  { %v2069_v4 = vadd.f32 %v2068_v42, %v2067_v3 }
0x1416   :  { %v2070_v5 = vrot.slane %v2069_v4, 2 }
0x1418   :  { %v2071_v8 = vadd.f32 %v2070_v5, %v2069_v4 }
0x141a   :  { %v2072_v9 = vrot.slane %v2071_v8, 1 }
0x141c   :  { %v2073_v10 = vadd.f32 %v2072_v9, %v2071_v8 }
0x141e   :  { %v2074_v12 = vmul.f32 0.125, %v2073_v10 }
0x1420   :  { %v2082_v13 = vadd.f32 1e-05, %v2074_v12 }
0x1422   :  { %2868 = vrsqrt.f32 %v2082_v13 }
0x142f   :  { %v2869_v16 = vpop.eup %2868 }
0x1430   :  { %v2084_v19 = vmul.f32 %v2869_v16, %v2081_v15 }
0x1432   :  { %v2091_v20 = vadd.f32 %v2390_v17, %v2084_v19 }
0x1434   :  { %vm2092_vm14 = vcmp.ge.f32.partialorder %v2091_v20, 0.0  ;;  %v2093_v18 = vmul.f32 0.8, %v2091_v20 }
0x1436   :  { %v2094_v39 = vsel %vm2092_vm14, %v2091_v20, %v2093_v18 }
0x1437   :  { %2732 = vmatmul.mubr.msk.f32.vlgmr.msra.gmra.mxu1 %vm2056_vm13, %v2094_v39 }
0x14f7   :  { %v2177_v34 = vpop.f32.mrf.mxu1 }
0x14f8   :  { %v2178_v58 = vadd.f32 %v2391_v30, %v2177_v34 }
0x14f9   :  { %v2733_v60 = vpop.f32.mrf.mxu1 }
0x14fa   :  { %v2183_v61 = vsel %vm1927_vm11, %v2178_v58, 0.0 }
0x14fb   :  { %v2184_v63 = vrot.slane %v2183_v61, 4 }
0x14fd   :  { %v2185_v36 = vadd.f32 %v2184_v63, %v2183_v61 }
0x14ff   :  { %v2186_v38 = vrot.slane %v2185_v36, 2 }
0x1501   :  { %v2187_v2 = vadd.f32 %v2186_v38, %v2185_v36 }
0x1503   :  { %v2188_v40 = vrot.slane %v2187_v2, 1 }
0x1505   :  { %v2189_v6 = vadd.f32 %v2188_v40, %v2187_v2 }
0x1507   :  { %v2190_v41 = vmul.f32 0.125, %v2189_v6 }
0x1509   :  { %v2191_v7 = vsub.f32 %v2178_v58, %v2190_v41 }
0x150b   :  { %v2192_v35 = vmul.f32 %v2191_v7, %v2191_v7  ;;  %v2207_v50 = vmul.f32 %v2393_v49, %v2191_v7 }
0x150d   :  { %v2193_v37 = vsel %vm1927_vm11, %v2192_v35, 0.0 }
0x150e   :  { %v2194_v11 = vrot.slane %v2193_v37, 4 }
0x1510   :  { %v2195_v0 = vadd.f32 %v2194_v11, %v2193_v37 }
0x1512   :  { %v2196_v43 = vrot.slane %v2195_v0, 2 }
0x1514   :  { %v2197_v44 = vadd.f32 %v2196_v43, %v2195_v0 }
0x1516   :  { %v2198_v45 = vrot.slane %v2197_v44, 1 }
0x1518   :  { %v2199_v46 = vadd.f32 %v2198_v45, %v2197_v44 }
0x151a   :  { %v2200_v47 = vmul.f32 0.125, %v2199_v46 }
0x151c   :  { %v2208_v48 = vadd.f32 1e-05, %v2200_v47 }
0x151e   :  { %2870 = vrsqrt.f32 %v2208_v48 }
0x152b   :  { %v2871_v51 = vpop.eup %2870 }
0x152c   :  { %v2210_v29 = vmul.f32 %v2871_v51, %v2207_v50 }
0x152e   :  { %v2217_v31 = vadd.f32 %v2394_v52, %v2210_v29 }
0x1530   :  { %vm2218_vm15 = vcmp.ge.f32.partialorder %v2217_v31, 0.0  ;;  %v2219_v32 = vmul.f32 0.8, %v2217_v31 }
0x1532   :  { %v2220_v53 = vsel %vm2218_vm15, %v2217_v31, %v2219_v32 }
0x1533   :  { %2751 = vmatmul.mubr.msk.f32.vlgmr.msra.gmra.mxu0 %vm1927_vm11, %v2220_v53 }
0x1534   :  { %3244 = shalt.err (!%p3241_p10)
}
0x1535   :  { %2329 = dma.vmem_to_hbm [thread:$0]  %s2327_s3, 128, %s4096_s26, [#allocation33]   ;;  %v2395_v33 = vld [vmem:[#allocation29] ss:$0 sm:$0xff] }
0x1536   :  { %s3327_s20 = smov [#allocation31]  }
0x1537   :  { %s2316_s11 = sshll.u32 %s3327_s20, 4  ;;  %s2317_s11 = int_to_ptr.vmem [resolvable:$true] %s2316_s11 }
0x1538   :  { %s3253_s28 = scalar_lea.vmem %s2317_s11, 128  ;;  %p3258_p12 = scmp.lt.s32.totalorder %s2317_s11, %s2317_s11 }
0x1539   :  { %p3254_p11 = scmp.ne.s32.totalorder %s2317_s11, %s3253_s28  ;;  %p3259_p13 = scmp.lt.s32.totalorder %s3253_s28, %s3253_s28 }
0x153b   :  { %p3260_p0 = por %p3259_p13, %p3258_p12 }
0x153d   :  { %p3261_p1 = pnand %p3260_p0, %p3254_p11 }
0x15f3   :  { %v2305_v54 = vpop.f32.mrf.mxu0 }
0x15f4   :  { %v2306_v56 = vadd.f32 %v2395_v33, %v2305_v54 }
0x15f5   :  { %v2752_v57 = vpop.f32.mrf.mxu0 }
0x15f6   :  { %2309 = vst.msk [vmem:[#allocation31] sm:$0xff] %vm1753_vm10, %v2306_v56 }
0x15f7   :  { %3264 = shalt.err (!%p3261_p1)
}
0x15f8   :  { %2319 = dma.vmem_to_hbm [thread:$0]  %s2317_s11, 128, %s4095_s25, [#allocation4]  }
0x15f9   :  { %3293 = dma.done.wait [#allocation4], 128  }
0x15fa   :  { %3294 = vsyncadd [#allocation4], 4294967168 }
0x15fb   :  { %3295 = dma.done.wait [#allocation33], 128  }
0x15fc   :  { %3296 = vsyncadd [#allocation33], 4294967168 }
0x15fd   :  { %2336 = vsyncpa [#allocation3], 1 }
0x15fe   :  { %2337 = vsyncpa [#allocation6], 1 }
0x15ff   :  { %2338 = vsyncpa [#allocation9], 1 }
0x1600   :  { %2339 = vsyncpa [#allocation12], 1 }
0x1601   :  { %2340 = vsyncpa [#allocation15], 1 }
0x1602   :  { %2341 = vsyncpa [#allocation18], 1 }
0x1603   :  { %2342 = vsyncpa [#allocation21], 1 }
0x1604   :  { %2343 = vsyncpa [#allocation24], 1 }
0x1605   :  { %2344 = vsyncpa [#allocation27], 1 }
0x1606   :  { %2345 = vsyncpa [#allocation30], 1 }
0x1607   :  { %2346 = vsyncpa [#allocation4], 1 }
0x1608   :  { %2347 = vsyncpa [#allocation33], 1 }

</bundles_post_ra>
